<compile_context>
chip_gen: v6e
topology: v6e:2x2x1
jax: 0.10.0
libtpu: 0.0.40
codegen_flags: <defaults>
</compile_context>

<pallas_src>
import numpy as np
import jax
import jax.numpy as jnp
from jax.experimental import pallas as pl
from jax.experimental.pallas import tpu as pltpu

_OUT_PAD = 128  # last-layer output columns padded to a full lane width


# ---------------------------------------------------------------------------
# Pallas kernel: fused 4-offset imnet MLP + softmax-weighted combine
# ---------------------------------------------------------------------------
def _make_jiif_mlp_kernel(n_layers, tm, din):
    def kernel(inp_ref, *refs):
        out_ref = refs[-1]
        wb = refs[:-1]                                    # w0,b0,w1,b1,...

        # (1, 4, tm, din) bf16 -> (4*tm, din): one GEMM per layer for all 4
        # neighbor offsets at once (rows are offset-major: row = k*tm + m).
        x = inp_ref[...].reshape(4 * tm, din)
        y = None
        for li in range(n_layers):
            w = wb[2 * li][...]                           # bf16
            b = wb[2 * li + 1][...]                       # f32 (1, H)
            y = jnp.dot(x, w, preferred_element_type=jnp.float32) + b
            if li < n_layers - 1:
                x = jnp.maximum(y, 0.0).astype(jnp.bfloat16)   # ReLU, back to bf16

        # y: (4*tm, 128) f32; col 0 = value, col 1 = weight logit, rest zero pad.
        # One XLU transpose makes everything downstream lane-dense over queries.
        yt = jnp.transpose(y, (1, 0))                     # (128, 4*tm)
        vals = yt[0:1, :]                                 # (1, 4*tm)
        logits = yt[1:2, :]                               # (1, 4*tm)
        v = [vals[:, k * tm:(k + 1) * tm] for k in range(4)]     # (1, tm) each
        l = [logits[:, k * tm:(k + 1) * tm] for k in range(4)]   # (1, tm) each

        # softmax over the 4 offsets, weighted sum of the value channel (f32)
        m = jnp.maximum(jnp.maximum(l[0], l[1]), jnp.maximum(l[2], l[3]))
        e = [jnp.exp(lk - m) for lk in l]
        denom = e[0] + e[1] + e[2] + e[3]
        num = v[0] * e[0] + v[1] * e[1] + v[2] * e[2] + v[3] * e[3]
        out_ref[...] = num * pl.reciprocal(denom, approx=True)   # (1, tm) lane-dense
    return kernel


def _pick_tm(M, tm_max=1024, tm_min=128):
    """Largest power-of-two tile (multiple of 128) keeping >=2 grid steps when
    possible, so v7x's two TensorCores both get work."""
    tm = tm_max
    while tm > tm_min and -(-M // tm) < 2:
        tm //= 2
    return max(tm, tm_min)


def jiif_imnet_pallas(inp_list, mlp_params, *, tm_max=1024):
    """inp_list: list of 4 arrays (M, Din) f32, one per neighbor offset.
    mlp_params: list of (W[in,out], b[out]); last layer has out=2."""
    assert len(inp_list) == 4
    M, Din = inp_list[0].shape
    n_layers = len(mlp_params)
    assert mlp_params[-1][0].shape[1] == 2

    tm = _pick_tm(M, tm_max)
    G = -(-M // tm)
    Mp = G * tm

    # Build the (G, 4, tm, Din) bf16 slab: contiguous per-tile DMA, offset-major
    # rows inside each tile (matches the kernel's reshape).
    def prep(x):
        x = x.astype(jnp.bfloat16)
        if Mp != M:
            x = jnp.pad(x, ((0, Mp - M), (0, 0)))
        return x.reshape(G, tm, Din)
    slab = jnp.stack([prep(x) for x in inp_list], axis=1)        # (G, 4, tm, Din)

    flat_params = []
    in_specs = [pl.BlockSpec((1, 4, tm, Din), lambda i: (i, 0, 0, 0))]
    flops = 0
    weight_bytes = 0
    for li, (w, b) in enumerate(mlp_params):
        if li == n_layers - 1:                           # pad (H,2) -> (H,128)
            w = jnp.pad(w, ((0, 0), (0, _OUT_PAD - w.shape[1])))
            b = jnp.pad(b, ((0, _OUT_PAD - b.shape[0]),))
        flops += 2 * 4 * Mp * w.shape[0] * w.shape[1]
        w_bf = w.astype(jnp.bfloat16)
        b2 = b.reshape(1, -1).astype(jnp.float32)
        flat_params += [w_bf, b2]
        weight_bytes += w_bf.size * 2 + b2.size * 4
        in_specs.append(pl.BlockSpec(w_bf.shape, lambda i: (0, 0)))
        in_specs.append(pl.BlockSpec(b2.shape, lambda i: (0, 0)))

    cost = pl.CostEstimate(
        flops=flops,
        transcendentals=5 * Mp,                          # 4 exp + 1 recip / query
        bytes_accessed=slab.size * 2 + weight_bytes + Mp * 4)

    out = pl.pallas_call(
        _make_jiif_mlp_kernel(n_layers, tm, Din),
        grid=(G,),
        in_specs=in_specs,
        out_specs=pl.BlockSpec((1, tm), lambda i: (0, i)),       # lane-dense store
        out_shape=jax.ShapeDtypeStruct((1, Mp), jnp.float32),
        compiler_params=pltpu.CompilerParams(dimension_semantics=("parallel",)),
        cost_estimate=cost,
    )(slab, *flat_params)
    return out[0, :M].reshape(M, 1)


def jiif_imnet_ref(inp_list, mlp_params):
    """Pure-JAX f32 reference of the same computation (for a sanity check)."""
    outs = []
    for x in inp_list:
        for li, (w, b) in enumerate(mlp_params):
            x = jnp.dot(x, w, preferred_element_type=jnp.float32) + b
            if li < len(mlp_params) - 1:
                x = jax.nn.relu(x)
        outs.append(x)
    preds = jnp.stack(outs, axis=-1)                     # (M, 2, 4)
    wgt = jax.nn.softmax(preds[:, 1, :], axis=-1)
    return jnp.sum(preds[:, 0, :] * wgt, axis=-1, keepdims=True)


# ---------------------------------------------------------------------------
# Plain-JAX glue: make_coord, nearest grid_sample (gathers), EDSR encoders
# ---------------------------------------------------------------------------
def make_coord(shape):
    seqs = []
    for n in shape:
        r = 1.0 / n
        seqs.append(-1.0 + r + 2.0 * r * jnp.arange(n, dtype=jnp.float32))
    g0, g1 = jnp.meshgrid(seqs[0], seqs[1], indexing="ij")
    return jnp.stack([g0, g1], axis=-1)                  # (h, w, 2)


def grid_sample_nearest(inp, coord_rc):
    """F.grid_sample(inp, coord.flip(-1)[:,None], mode='nearest',
    align_corners=False, padding_mode='zeros') followed by permute(0,2,1).

    inp: (B, C, H, W); coord_rc: (B, N, 2) as (row_coord, col_coord) in [-1,1].
    returns (B, N, C).
    """
    B, C, H, W = inp.shape
    y = coord_rc[..., 0]                                 # row  -> height axis
    x = coord_rc[..., 1]                                 # col  -> width axis
    ix = ((x + 1.0) * W - 1.0) / 2.0                     # align_corners=False
    iy = ((y + 1.0) * H - 1.0) / 2.0
    ixn = jnp.rint(ix).astype(jnp.int32)                 # round half-to-even
    iyn = jnp.rint(iy).astype(jnp.int32)
    inb = (ixn >= 0) & (ixn < W) & (iyn >= 0) & (iyn < H)
    ixc = jnp.clip(ixn, 0, W - 1)
    iyc = jnp.clip(iyn, 0, H - 1)
    gathered = jax.vmap(lambda im, yy, xx: im[:, yy, xx])(inp, iyc, ixc)  # (B,C,N)
    gathered = gathered * inb[:, None, :].astype(inp.dtype)               # zeros pad
    return jnp.transpose(gathered, (0, 2, 1))            # (B, N, C)


def conv2d(x, w, b):
    y = jax.lax.conv_general_dilated(
        x, w, window_strides=(1, 1), padding="SAME",
        dimension_numbers=("NCHW", "OIHW", "NCHW"))
    return y + b[None, :, None, None]


def edsr_forward(x, p):
    # TODO(synk): make_edsr_baseline source not provided with the module;
    # using a faithful EDSR-baseline structure (head conv / resblocks /
    # body conv / global skip, no upsampler) with a reduced resblock count.
    x = conv2d(x, *p["head"])
    res = x
    for (c1, c2) in p["blocks"]:
        res = res + conv2d(jax.nn.relu(conv2d(res, *c1)), *c2)
    res = conv2d(res, *p["tail"])
    return x + res


# ---------------------------------------------------------------------------
# JIIF query + forward
# ---------------------------------------------------------------------------
def _build_query_inputs(feat, coord, hr_guide, lr_guide):
    """Returns a list of 4 arrays (B*N, Din), one per LR-neighbor offset."""
    b, c, h, w = feat.shape
    B, N, _ = coord.shape
    feat_coord = jnp.broadcast_to(
        jnp.transpose(make_coord((h, w)), (2, 0, 1))[None], (b, 2, h, w))

    q_guide_hr = grid_sample_nearest(hr_guide, coord)     # (B, N, guide_dim)

    rx = 1.0 / h
    ry = 1.0 / w
    scale_hw = jnp.array([h, w], dtype=jnp.float32)

    inps = []
    for vx in (-1, 1):
        for vy in (-1, 1):
            shift = jnp.array([vx * rx, vy * ry], dtype=jnp.float32)
            coord_ = coord + shift
            q_feat = grid_sample_nearest(feat, coord_)         # (B, N, feat_dim)
            q_coord = grid_sample_nearest(feat_coord, coord_)  # (B, N, 2)
            rel_coord = (coord - q_coord) * scale_hw           # (B, N, 2)
            q_guide_lr = grid_sample_nearest(lr_guide, coord_) # (B, N, guide_dim)
            q_guide = jnp.concatenate([q_guide_hr, q_guide_hr - q_guide_lr], axis=-1)
            inp = jnp.concatenate([q_feat, q_guide, rel_coord], axis=-1)
            inps.append(inp.reshape(B * N, -1))
    return inps                                           # 4 x (B*N, Din)


def jiif_query(feat, coord, hr_guide, lr_guide, imnet_params, image=None,
               use_pallas=True):
    # `image` arg mirrors the PyTorch signature; it is unused there too.
    B, N, _ = coord.shape
    inp_list = _build_query_inputs(feat, coord, hr_guide, lr_guide)
    if use_pallas:
        ret = jiif_imnet_pallas(inp_list, imnet_params)
    else:
        ret = jiif_imnet_ref(inp_list, imnet_params)
    return ret.reshape(B, N, 1)


def jiif_forward(params, data, use_pallas=True):
    hr_guide = edsr_forward(data["image"], params["image_encoder"])
    lr_guide = edsr_forward(data["lr_image"], params["image_encoder"])
    feat = edsr_forward(data["lr"], params["depth_encoder"])
    image_unused = jnp.repeat(data["hr_depth"], 3, axis=1)
    ret = jiif_query(feat, data["hr_coord"], hr_guide, lr_guide,
                     params["imnet"], image=image_unused, use_pallas=use_pallas)
    return data["lr_pixel"] + ret


# ---------------------------------------------------------------------------
# Deterministic parameter init
# ---------------------------------------------------------------------------
def _conv_init(key, cin, cout, ksize=3):
    kw, kb = jax.random.split(key)
    w = jax.random.normal(kw, (cout, cin, ksize, ksize), jnp.float32) * 0.05
    b = jax.random.normal(kb, (cout,), jnp.float32) * 0.01
    return w, b


def init_edsr_params(key, n_colors, n_feats, n_resblocks=2):
    ks = jax.random.split(key, 2 + 2 * n_resblocks)
    p = {"head": _conv_init(ks[0], n_colors, n_feats)}
    blocks = []
    for i in range(n_resblocks):
        blocks.append((_conv_init(ks[1 + 2 * i], n_feats, n_feats),
                       _conv_init(ks[2 + 2 * i], n_feats, n_feats)))
    p["blocks"] = blocks
    p["tail"] = _conv_init(ks[1 + 2 * n_resblocks], n_feats, n_feats)
    return p


def init_mlp_params(key, in_dim, out_dim, hidden_list):
    dims = [in_dim] + list(hidden_list) + [out_dim]
    ks = jax.random.split(key, len(dims) - 1)
    params = []
    for k, di, do in zip(ks, dims[:-1], dims[1:]):
        kw, kb = jax.random.split(k)
        w = jax.random.normal(kw, (di, do), jnp.float32) / jnp.sqrt(float(di))
        b = jax.random.normal(kb, (do,), jnp.float32) * 0.01
        params.append((w, b))
    return params


def init_jiif_params(key, feat_dim, guide_dim, mlp_dim):
    k1, k2, k3 = jax.random.split(key, 3)
    imnet_in_dim = feat_dim + guide_dim * 2 + 2
    return {
        "image_encoder": init_edsr_params(k1, n_colors=3, n_feats=guide_dim),
        "depth_encoder": init_edsr_params(k2, n_colors=1, n_feats=feat_dim),
        "imnet": init_mlp_params(k3, imnet_in_dim, 2, mlp_dim),
    }


# ---------------------------------------------------------------------------
if __name__ == "__main__":
    key = jax.random.PRNGKey(0)
    B = 2
    feat_dim, guide_dim = 16, 16
    mlp_dim = [64, 32]
    h = w = 8        # LR spatial size
    H = W = 16       # HR spatial size
    N = 128          # query points per batch element

    keys = jax.random.split(key, 8)
    data = {
        "image":    jax.random.normal(keys[0], (B, 3, H, W), jnp.float32),
        "lr":       jax.random.normal(keys[1], (B, 1, h, w), jnp.float32),
        "lr_image": jax.random.normal(keys[2], (B, 3, h, w), jnp.float32),
        "hr_depth": jax.random.normal(keys[3], (B, 1, H, W), jnp.float32),
        "hr_coord": jax.random.uniform(keys[4], (B, N, 2), jnp.float32, -0.95, 0.95),
        "lr_pixel": jax.random.normal(keys[5], (B, N, 1), jnp.float32),
    }
    params = init_jiif_params(keys[6], feat_dim, guide_dim, mlp_dim)

    out = jiif_forward(params, data, use_pallas=True)
    out = jax.block_until_ready(out)

    ref = jiif_forward(params, data, use_pallas=False)
    np.testing.assert_allclose(np.asarray(out), np.asarray(ref),
                               rtol=5e-2, atol=5e-2)
    assert out.shape == (B, N, 1)
    print("KERNEL_OK")
</pallas_src>

<mosaic_0001>
module attributes {stable_mosaic.version = 11 : i64} {
  func.func @kernel(%arg0: i32, %arg1: memref<1x4x128x50xbf16, #tpu.memory_space<vmem>>, %arg2: memref<50x64xbf16, #tpu.memory_space<vmem>>, %arg3: memref<1x64xf32, #tpu.memory_space<vmem>>, %arg4: memref<64x32xbf16, #tpu.memory_space<vmem>>, %arg5: memref<1x32xf32, #tpu.memory_space<vmem>>, %arg6: memref<32x128xbf16, #tpu.memory_space<vmem>>, %arg7: memref<1x128xf32, #tpu.memory_space<vmem>>, %arg8: memref<1x128xf32, #tpu.memory_space<vmem>>) attributes {dimension_semantics = [#tpu.dimension_semantics<parallel>], iteration_bounds = array<i64: 2>, scalar_prefetch = 0 : i64, scratch_operands = 0 : i64, tpu.core_type = #tpu.core_type<tc>, window_params = [{transform_indices = @transform_0, window_bounds = array<i64: 1, 4, 128, 50>}, {pipeline_mode = #tpu.pipeline_mode<synchronous>, transform_indices = @transform_1, window_bounds = array<i64: 50, 64>}, {pipeline_mode = #tpu.pipeline_mode<synchronous>, transform_indices = @transform_2, window_bounds = array<i64: 1, 64>}, {pipeline_mode = #tpu.pipeline_mode<synchronous>, transform_indices = @transform_3, window_bounds = array<i64: 64, 32>}, {pipeline_mode = #tpu.pipeline_mode<synchronous>, transform_indices = @transform_4, window_bounds = array<i64: 1, 32>}, {pipeline_mode = #tpu.pipeline_mode<synchronous>, transform_indices = @transform_5, window_bounds = array<i64: 32, 128>}, {pipeline_mode = #tpu.pipeline_mode<synchronous>, transform_indices = @transform_6, window_bounds = array<i64: 1, 128>}, {transform_indices = @transform_7, window_bounds = array<i64: 1, 128>}]} {
    %c0 = arith.constant 0 : index
    %c0_0 = arith.constant 0 : index
    %c0_1 = arith.constant 0 : index
    %c0_2 = arith.constant 0 : index
    %0 = vector.load %arg1[%c0, %c0_0, %c0_1, %c0_2] : memref<1x4x128x50xbf16, #tpu.memory_space<vmem>>, vector<1x4x128x50xbf16>
    %1 = vector.shape_cast %0 : vector<1x4x128x50xbf16> to vector<512x50xbf16>
    %c0_3 = arith.constant 0 : index
    %c0_4 = arith.constant 0 : index
    %2 = vector.load %arg2[%c0_3, %c0_4] : memref<50x64xbf16, #tpu.memory_space<vmem>>, vector<50x64xbf16>
    %c0_5 = arith.constant 0 : index
    %c0_6 = arith.constant 0 : index
    %3 = vector.load %arg3[%c0_5, %c0_6] : memref<1x64xf32, #tpu.memory_space<vmem>>, vector<1x64xf32>
    %cst = arith.constant dense<0.000000e+00> : vector<512x64xf32>
    %4 = tpu.matmul %1, %2, %cst {dimension_numbers = #tpu.dot_dimension_numbers<[1], [0], [0], [1], [0, 0, 1, 1], [], []>} : vector<512x50xbf16>, vector<50x64xbf16>, vector<512x64xf32> -> vector<512x64xf32>
    %5 = vector.broadcast %3 : vector<1x64xf32> to vector<512x64xf32>
    %6 = arith.addf %4, %5 : vector<512x64xf32>
    %cst_7 = arith.constant 0.000000e+00 : f32
    %7 = vector.broadcast %cst_7 : f32 to vector<512x64xf32>
    %8 = arith.maximumf %6, %7 : vector<512x64xf32>
    %9 = arith.truncf %8 : vector<512x64xf32> to vector<512x64xbf16>
    %c0_8 = arith.constant 0 : index
    %c0_9 = arith.constant 0 : index
    %10 = vector.load %arg4[%c0_8, %c0_9] : memref<64x32xbf16, #tpu.memory_space<vmem>>, vector<64x32xbf16>
    %c0_10 = arith.constant 0 : index
    %c0_11 = arith.constant 0 : index
    %11 = vector.load %arg5[%c0_10, %c0_11] : memref<1x32xf32, #tpu.memory_space<vmem>>, vector<1x32xf32>
    %cst_12 = arith.constant dense<0.000000e+00> : vector<512x32xf32>
    %12 = tpu.matmul %9, %10, %cst_12 {dimension_numbers = #tpu.dot_dimension_numbers<[1], [0], [0], [1], [0, 0, 1, 1], [], []>} : vector<512x64xbf16>, vector<64x32xbf16>, vector<512x32xf32> -> vector<512x32xf32>
    %13 = vector.broadcast %11 : vector<1x32xf32> to vector<512x32xf32>
    %14 = arith.addf %12, %13 : vector<512x32xf32>
    %cst_13 = arith.constant 0.000000e+00 : f32
    %15 = vector.broadcast %cst_13 : f32 to vector<512x32xf32>
    %16 = arith.maximumf %14, %15 : vector<512x32xf32>
    %17 = arith.truncf %16 : vector<512x32xf32> to vector<512x32xbf16>
    %c0_14 = arith.constant 0 : index
    %c0_15 = arith.constant 0 : index
    %18 = vector.load %arg6[%c0_14, %c0_15] : memref<32x128xbf16, #tpu.memory_space<vmem>>, vector<32x128xbf16>
    %c0_16 = arith.constant 0 : index
    %c0_17 = arith.constant 0 : index
    %19 = vector.load %arg7[%c0_16, %c0_17] : memref<1x128xf32, #tpu.memory_space<vmem>>, vector<1x128xf32>
    %cst_18 = arith.constant dense<0.000000e+00> : vector<512x128xf32>
    %20 = tpu.matmul %17, %18, %cst_18 {dimension_numbers = #tpu.dot_dimension_numbers<[1], [0], [0], [1], [0, 0, 1, 1], [], []>} : vector<512x32xbf16>, vector<32x128xbf16>, vector<512x128xf32> -> vector<512x128xf32>
    %21 = vector.broadcast %19 : vector<1x128xf32> to vector<512x128xf32>
    %22 = arith.addf %20, %21 : vector<512x128xf32>
    %23 = tpu.transpose %22, [1, 0] : vector<512x128xf32> -> vector<128x512xf32>
    %24 = vector.extract_strided_slice %23 {offsets = [0, 0], sizes = [1, 512], strides = [1, 1]} : vector<128x512xf32> to vector<1x512xf32>
    %25 = vector.extract_strided_slice %23 {offsets = [1, 0], sizes = [1, 512], strides = [1, 1]} : vector<128x512xf32> to vector<1x512xf32>
    %26 = vector.extract_strided_slice %24 {offsets = [0, 0], sizes = [1, 128], strides = [1, 1]} : vector<1x512xf32> to vector<1x128xf32>
    %27 = vector.extract_strided_slice %24 {offsets = [0, 128], sizes = [1, 128], strides = [1, 1]} : vector<1x512xf32> to vector<1x128xf32>
    %28 = vector.extract_strided_slice %24 {offsets = [0, 256], sizes = [1, 128], strides = [1, 1]} : vector<1x512xf32> to vector<1x128xf32>
    %29 = vector.extract_strided_slice %24 {offsets = [0, 384], sizes = [1, 128], strides = [1, 1]} : vector<1x512xf32> to vector<1x128xf32>
    %30 = vector.extract_strided_slice %25 {offsets = [0, 0], sizes = [1, 128], strides = [1, 1]} : vector<1x512xf32> to vector<1x128xf32>
    %31 = vector.extract_strided_slice %25 {offsets = [0, 128], sizes = [1, 128], strides = [1, 1]} : vector<1x512xf32> to vector<1x128xf32>
    %32 = vector.extract_strided_slice %25 {offsets = [0, 256], sizes = [1, 128], strides = [1, 1]} : vector<1x512xf32> to vector<1x128xf32>
    %33 = vector.extract_strided_slice %25 {offsets = [0, 384], sizes = [1, 128], strides = [1, 1]} : vector<1x512xf32> to vector<1x128xf32>
    %34 = arith.maximumf %30, %31 : vector<1x128xf32>
    %35 = arith.maximumf %32, %33 : vector<1x128xf32>
    %36 = arith.maximumf %34, %35 : vector<1x128xf32>
    %37 = arith.subf %30, %36 : vector<1x128xf32>
    %38 = math.exp %37 : vector<1x128xf32>
    %39 = arith.subf %31, %36 : vector<1x128xf32>
    %40 = math.exp %39 : vector<1x128xf32>
    %41 = arith.subf %32, %36 : vector<1x128xf32>
    %42 = math.exp %41 : vector<1x128xf32>
    %43 = arith.subf %33, %36 : vector<1x128xf32>
    %44 = math.exp %43 : vector<1x128xf32>
    %45 = arith.addf %38, %40 : vector<1x128xf32>
    %46 = arith.addf %45, %42 : vector<1x128xf32>
    %47 = arith.addf %46, %44 : vector<1x128xf32>
    %48 = arith.mulf %26, %38 : vector<1x128xf32>
    %49 = arith.mulf %27, %40 : vector<1x128xf32>
    %50 = arith.addf %48, %49 : vector<1x128xf32>
    %51 = arith.mulf %28, %42 : vector<1x128xf32>
    %52 = arith.addf %50, %51 : vector<1x128xf32>
    %53 = arith.mulf %29, %44 : vector<1x128xf32>
    %54 = arith.addf %52, %53 : vector<1x128xf32>
    %55 = tpu.reciprocal %47 {approx = true} : vector<1x128xf32> -> vector<1x128xf32>
    %56 = arith.mulf %54, %55 : vector<1x128xf32>
    %c0_19 = arith.constant 0 : index
    %c0_20 = arith.constant 0 : index
    %57 = vector.load %arg8[%c0_19, %c0_20] : memref<1x128xf32, #tpu.memory_space<vmem>>, vector<1x128xf32>
    tpu.vector_store %arg8[%c0_19, %c0_20], %56 {strides = array<i32>} : memref<1x128xf32, #tpu.memory_space<vmem>>, vector<1x128xf32>,
    return
  }
  func.func @transform_0(%arg0: i32) -> (i32, i32, i32, i32) {
    %c0_i32 = arith.constant 0 : i32
    %c0_i32_0 = arith.constant 0 : i32
    %c0_i32_1 = arith.constant 0 : i32
    %c0_i32_2 = arith.constant 0 : i32
    return %arg0, %c0_i32, %c0_i32_0, %c0_i32_1 : i32, i32, i32, i32
  }
  func.func @transform_1(%arg0: i32) -> (i32, i32) {
    %c0_i32 = arith.constant 0 : i32
    %c0_i32_0 = arith.constant 0 : i32
    %c0_i32_1 = arith.constant 0 : i32
    return %c0_i32, %c0_i32_0 : i32, i32
  }
  func.func @transform_2(%arg0: i32) -> (i32, i32) {
    %c0_i32 = arith.constant 0 : i32
    %c0_i32_0 = arith.constant 0 : i32
    %c0_i32_1 = arith.constant 0 : i32
    return %c0_i32, %c0_i32_0 : i32, i32
  }
  func.func @transform_3(%arg0: i32) -> (i32, i32) {
    %c0_i32 = arith.constant 0 : i32
    %c0_i32_0 = arith.constant 0 : i32
    %c0_i32_1 = arith.constant 0 : i32
    return %c0_i32, %c0_i32_0 : i32, i32
  }
  func.func @transform_4(%arg0: i32) -> (i32, i32) {
    %c0_i32 = arith.constant 0 : i32
    %c0_i32_0 = arith.constant 0 : i32
    %c0_i32_1 = arith.constant 0 : i32
    return %c0_i32, %c0_i32_0 : i32, i32
  }
  func.func @transform_5(%arg0: i32) -> (i32, i32) {
    %c0_i32 = arith.constant 0 : i32
    %c0_i32_0 = arith.constant 0 : i32
    %c0_i32_1 = arith.constant 0 : i32
    return %c0_i32, %c0_i32_0 : i32, i32
  }
  func.func @transform_6(%arg0: i32) -> (i32, i32) {
    %c0_i32 = arith.constant 0 : i32
    %c0_i32_0 = arith.constant 0 : i32
    %c0_i32_1 = arith.constant 0 : i32
    return %c0_i32, %c0_i32_0 : i32, i32
  }
  func.func @transform_7(%arg0: i32) -> (i32, i32) {
    %c0_i32 = arith.constant 0 : i32
    %c0_i32_0 = arith.constant 0 : i32
    return %c0_i32, %arg0 : i32, i32
  }
}

</mosaic_0001>

<bundles_post_ra>
// kernel: tpu_custom_call.1
= control target key start
LH: loop header
LB: loop body
LE: loop exit
PB: predicated region body
PF: predicated region fallthrough
CT: control target
= control target key end

     0   :  { %12 = vsyncpa [#allocation3], 0  ;;  %s3375_s0 = inlined_call_operand.vmem [shape: bf16[2,4,128,50], index: 0, kind: input, shape index: {}]   ;;  %s3376_s1 = inlined_call_operand.vmem [shape: bf16[50,64], index: 1, kind: input, shape index: {}]   ;;  %s3377_s2 = inlined_call_operand.vmem [shape: f32[1,64], index: 2, kind: input, shape index: {}]   ;;  %s3378_s3 = inlined_call_operand.vmem [shape: bf16[64,32], index: 3, kind: input, shape index: {}]   ;;  %s3379_s4 = inlined_call_operand.vmem [shape: f32[1,32], index: 4, kind: input, shape index: {}]   ;;  %s3380_s5 = inlined_call_operand.vmem [shape: bf16[32,128], index: 5, kind: input, shape index: {}]   ;;  %s3381_s6 = inlined_call_operand.vmem [shape: f32[1,128], index: 6, kind: input, shape index: {}]   ;;  %s3382_s7 = inlined_call_operand.hbm [shape: f32[1,256], index: 7, kind: output, shape index: {}]  }
   0x1   :  { %14 = vsyncpa [#allocation3 + $0x1], 0  ;;  %s2864_s24 = smov 0   ;;  %s2866_s25 = smov 0  }
   0x2   :  { %s2868_s26 = smov 0   ;;  %s2870_s27 = smov 0  }
   0x3 LB: > { %s2885_s28 = sadd.s32 4294967295, %s2821_s27   ;;  %s2191_s29 = sadd.s32 4294967294, %s2821_s27   ;;  %s2821_s27 = sphi %s2870_s27, %s3388_s27   ;;  %s2817_s26 = sphi %s2868_s26, %s3387_s26   ;;  %s2813_s25 = sphi %s2866_s25, %s3386_s25   ;;  %s2809_s24 = sphi %s2864_s24, %s3385_s24  }
   0x4   : > { %s2889_s30 = sadd.s32 1, %s2821_s27   ;;  %s179_s8 = sadd.s32 1, %s2817_s26 }
   0x5   : > { %s176_s9 = ssub.s32 %s2821_s27, %s2889_s30  ;;  %p189_p0 = scmp.ne.s32.totalorder %s2817_s26, %s2813_s25 }
   0x6   : > { %p177_p1 = scmp.eq.s32.totalorder %s176_s9, 0  ;;  %p190_p2 = scmp.eq.s32.totalorder %s2885_s28, 1 }
   0x7   : > { %p195_p3 = scmp.ne.s32.totalorder %s2813_s25, %s2809_s24  ;;  %p196_p4 = scmp.eq.s32.totalorder %s2191_s29, 1 }
   0x8   : > { %s2900_s10 = scalar_select %p177_p1, %s2817_s26, %s179_s8  }
   0x9   : > { %p2902_p5 = por %p190_p2, %p189_p0  ;;  %p2906_p6 = por %p196_p4, %p195_p3 }
   0xa   : > { %p2194_p7 = scmp.ge.s32.totalorder %s2821_s27, 1  ;;  %p240_p8 = scmp.lt.s32.totalorder %s2821_s27, 3 }
   0xc   : > { %p241_p9 = pnand %p2194_p7, %p240_p8 }
   0xd   : > { %p271_p10 = scmp.lt.s32.totalorder (!%p241_p9), %s2885_s28, 1  ;;  %s269_s16 = sand.u32 (!%p241_p9), 1, %s2813_s25  }
   0xe   : > { %244 = sbr.rel (%p241_p9) target bundleno = 926 (0x39e), region = 48  ;;  %s270_s18 = scalar_lea.vmem (!%p241_p9), [#allocation2], %s269_s16 }
   0xf   : > { %s2136_s19 = sshll.u32 (!%p241_p9), %s270_s18, 4  ;;  %s2124_s29 = scalar_lea.sflag (!%p241_p9), [#allocation3], %s269_s16  ;;  %s2137_s19 = int_to_ptr.vmem [resolvable:$true] %s2136_s19 }
  0x10   : > { %s2823_s8 = smov (!%p241_p9), [#allocation2]  }
  0x11   : > { %s2765_s9 = sshll.u32 (!%p241_p9), %s2823_s8, 4  ;;  %s2766_s9 = int_to_ptr.vmem [resolvable:$false] %s2765_s9 }
  0x12   : > { %p2768_p0 = scmp.lt.s32.totalorder (!%p241_p9), %s2137_s19, %s2766_s9 }
  0x13   : > { %v2709_v0 = vld [vmem:[%s3376_s1 + $0x18] ss:$0 sps:$4 sm:$0x11]   ;;  %vm633_vm0 = vcmask 1040384   ;;  %v2710_v1 = vld [vmem:[%s3376_s1 + $0x10] sm:$0xff]   ;;  %s272_s17 = scalar_select %p271_p10, %s2885_s28, 1 }
  0x14   : > { %2668 = vmatprep.subr.msk.bf16.mxu0 %vm633_vm0, %v2709_v0  ;;  %v635_v2 = vsel %vm633_vm0, %v2709_v0, 0  ;;  %2669 = vmatprep.subr.msk.bf16.mxu1 %vm633_vm0, %v2709_v0  ;;  %v2711_v3 = vld [vmem:[%s3376_s1 + $0x8] sm:$0xff]   ;;  %vm536_vm1 = vcmask 408576   ;;  %v2712_v5 = vld [vmem:[%s3376_s1] sm:$0xff]   ;;  %v2745_v6 = vld [vmem:[%s3378_s3 + $0x18] sm:$0xff]   ;;  %vm1061_vm2 = vcmask 523264  }
  0x15   : > { %2449 = vmatpush3.bf16.msra.mxu0 %v635_v2  ;;  %2664 = vmatpush3.bf16.msra.mxu1 %v635_v2  ;;  %s2341_s20 = sshll.u32 %s272_s17, 8  ;;  %v2746_v12 = vld [vmem:[%s3378_s3 + $0x10] sm:$0xff]   ;;  %v2747_v15 = vld [vmem:[%s3378_s3 + $0x8] sm:$0xff]   ;;  %v2748_v24 = vld [vmem:[%s3378_s3] sm:$0xff]   ;;  %vm1566_vm3 = vcmask 261120   ;;  %s2338_s17 = sshll.u32 %s2885_s28, 4 }
  0x16   : > { %2450 = vmatprep.subr.bf16.mxu0 %v2710_v1  ;;  %2661 = vmatprep.subr.bf16.mxu1 %v2710_v1  ;;  %s2926_s23 = scalar_lea.vmem %s3375_s0, %s2341_s20  ;;  %v3010_v43 = vld [vmem:[%s3377_s2] ss:$0 sm:$0xff]  ;;  %v2749_v49 = vld [vmem:[%s3380_s5 + $0x8] sm:$0xff]   ;;  %s2134_s22 = scalar_lea.hbm %s3382_s7, %s2338_s17 }
  0x17   : > { %v2713_v4 = vld [vmem:[%s2926_s23] sm:$0xff]   ;;  %v2714_v7 = vld [vmem:[%s2926_s23 + $0x8] sm:$0xff]   ;;  %v2715_v8 = vld [vmem:[%s2926_s23 + $0x10] sm:$0xff]   ;;  %s2767_s28 = scalar_lea.vmem %s2766_s9, 32 }
  0x18   : > { %2456 = vmatprep.mubr.msk.bf16.mxu0 %vm536_vm1, %v2713_v4  ;;  %v2716_v9 = vld [vmem:[%s2926_s23 + $0x18] sm:$0xff]   ;;  %v2717_v10 = vld [vmem:[%s2926_s23 + $0x20] sm:$0xff]   ;;  %v2730_v13 = vld [vmem:[%s2926_s23 + $0x88] sm:$0xff]  }
  0x19   : > { %2451 = vmatpush3.bf16.msra.mxu0 %v2710_v1  ;;  %2665 = vmatpush3.bf16.msra.mxu1 %v2710_v1  ;;  %v2729_v11 = vld [vmem:[%s2926_s23 + $0x80] sm:$0xff]   ;;  %v2731_v14 = vld [vmem:[%s2926_s23 + $0x90] sm:$0xff]   ;;  %v2718_v16 = vld [vmem:[%s2926_s23 + $0x28] sm:$0xff]  }
  0x1a   : > { %2452 = vmatprep.subr.bf16.mxu0 %v2711_v3  ;;  %2662 = vmatprep.subr.bf16.mxu1 %v2711_v3  ;;  %v2719_v17 = vld [vmem:[%s2926_s23 + $0x30] sm:$0xff]   ;;  %v2732_v18 = vld [vmem:[%s2926_s23 + $0x98] sm:$0xff]   ;;  %v2733_v19 = vld [vmem:[%s2926_s23 + $0xa0] sm:$0xff]  }
  0x1b   : > { %2488 = vmatprep.mubr.msk.bf16.mxu1 %vm536_vm1, %v2729_v11  ;;  %v2720_v20 = vld [vmem:[%s2926_s23 + $0x38] sm:$0xff]   ;;  %v2721_v21 = vld [vmem:[%s2926_s23 + $0x40] sm:$0xff]   ;;  %v2734_v22 = vld [vmem:[%s2926_s23 + $0xa8] sm:$0xff]  }
  0x1c   : > { %v2735_v23 = vld [vmem:[%s2926_s23 + $0xb0] sm:$0xff]   ;;  %v2722_v25 = vld [vmem:[%s2926_s23 + $0x48] sm:$0xff]   ;;  %v2736_v26 = vld [vmem:[%s2926_s23 + $0xb8] sm:$0xff]  }
  0x1d   : > { %2453 = vmatpush3.bf16.msra.mxu0 %v2711_v3  ;;  %2666 = vmatpush3.bf16.msra.mxu1 %v2711_v3  ;;  %v2723_v27 = vld [vmem:[%s2926_s23 + $0x50] sm:$0xff]   ;;  %v2737_v28 = vld [vmem:[%s2926_s23 + $0xc0] sm:$0xff]   ;;  %v2724_v29 = vld [vmem:[%s2926_s23 + $0x58] sm:$0xff]  }
  0x1e   : > { %2454 = vmatprep.subr.bf16.mxu0 %v2712_v5  ;;  %2663 = vmatprep.subr.bf16.mxu1 %v2712_v5  ;;  %v2738_v30 = vld [vmem:[%s2926_s23 + $0xc8] sm:$0xff]   ;;  %v2725_v31 = vld [vmem:[%s2926_s23 + $0x60] sm:$0xff]   ;;  %v2739_v32 = vld [vmem:[%s2926_s23 + $0xd0] sm:$0xff]  }
  0x1f   : > { %v2726_v33 = vld [vmem:[%s2926_s23 + $0x68] sm:$0xff]   ;;  %v2740_v34 = vld [vmem:[%s2926_s23 + $0xd8] sm:$0xff]   ;;  %v2727_v35 = vld [vmem:[%s2926_s23 + $0x70] sm:$0xff]  }
  0x20   : > { %v2741_v36 = vld [vmem:[%s2926_s23 + $0xe0] sm:$0xff]   ;;  %v2728_v37 = vld [vmem:[%s2926_s23 + $0x78] sm:$0xff]   ;;  %v2742_v38 = vld [vmem:[%s2926_s23 + $0xe8] sm:$0xff]  }
  0x21   : > { %2455 = vmatpush3.bf16.msra.mxu0 %v2712_v5  ;;  %2667 = vmatpush3.bf16.msra.mxu1 %v2712_v5  ;;  %v2743_v39 = vld [vmem:[%s2926_s23 + $0xf0] sm:$0xff]   ;;  %v2744_v40 = vld [vmem:[%s2926_s23 + $0xf8] sm:$0xff]   ;;  %v2750_v50 = vld [vmem:[%s3380_s5] sm:$0xff]   ;;  %s2761_s23 = scalar_lea.vmem %s2137_s19, 16 }
  0x22   : > { %2520 = vmatprep.subr.bf16.mxu1 %v2745_v6  ;;  %2592 = vmatprep.subr.bf16.mxu0 %v2749_v49  ;;  %p2762_p11 = scmp.ne.s32.totalorder %s2137_s19, %s2761_s23  ;;  %p2769_p1 = scmp.lt.s32.totalorder %s2767_s28, %s2761_s23 }
  0x24   : > { %2457 = vmatmul.mubr.msk.bf16.vlgmr.msra.gmra.mxu0 %vm536_vm1, %v2714_v7  ;;  %2489 = vmatmul.mubr.msk.bf16.vlgmr.msra.gmra.mxu1 %vm536_vm1, %v2730_v13  ;;  %p2763_p12 = pnand %p2762_p11, %p2902_p5  ;;  %p2770_p2 = por %p2769_p1, %p2768_p0 }
  0x25   : > { %2460 = vmatprep.mubr.msk.bf16.mxu0 %vm536_vm1, %v2715_v8  ;;  %2492 = vmatprep.mubr.msk.bf16.mxu1 %vm536_vm1, %v2731_v14 }
  0x26   : > { %2521 = vmatpush3.bf16.msra.mxu1 %v2745_v6  ;;  %2593 = vmatpush3.bf16.msra.mxu0 %v2749_v49  ;;  %p2764_p13 = pneg %p2763_p12 }
  0x27   : > { %2522 = vmatprep.subr.bf16.mxu1 %v2746_v12  ;;  %2594 = vmatprep.subr.bf16.mxu0 %v2750_v50 }
  0x28   : > { %p2771_p3 = pnand %p2770_p2, %p2764_p13 }
  0x2a   : > { %2523 = vmatpush3.bf16.msra.mxu1 %v2746_v12  ;;  %2595 = vmatpush3.bf16.msra.mxu0 %v2750_v50 }
  0x2b   : > { %2524 = vmatprep.subr.bf16.mxu1 %v2747_v15 }
  0x2c   : > { %2461 = vmatmul.mubr.msk.bf16.gmra.mxu0 %vm536_vm1, %v2716_v9  ;;  %2493 = vmatmul.mubr.msk.bf16.gmra.mxu1 %vm536_vm1, %v2732_v18 }
  0x2d   : > { %2464 = vmatprep.mubr.msk.bf16.mxu0 %vm536_vm1, %v2717_v10  ;;  %2496 = vmatprep.mubr.msk.bf16.mxu1 %vm536_vm1, %v2733_v19 }
  0x2e   : > { %2525 = vmatpush3.bf16.msra.mxu1 %v2747_v15 }
  0x2f   : > { %2526 = vmatprep.subr.bf16.mxu1 %v2748_v24 }
  0x32   : > { %2527 = vmatpush3.bf16.msra.mxu1 %v2748_v24 }
  0x34   : > { %2465 = vmatmul.mubr.msk.bf16.gmra.mxu0 %vm536_vm1, %v2718_v16  ;;  %2497 = vmatmul.mubr.msk.bf16.gmra.mxu1 %vm536_vm1, %v2734_v22 }
  0x35   : > { %2468 = vmatprep.mubr.msk.bf16.mxu0 %vm536_vm1, %v2719_v17  ;;  %2500 = vmatprep.mubr.msk.bf16.mxu1 %vm536_vm1, %v2735_v23 }
  0x3c   : > { %2469 = vmatmul.mubr.msk.bf16.gmra.mxu0 %vm536_vm1, %v2720_v20  ;;  %2501 = vmatmul.mubr.msk.bf16.gmra.mxu1 %vm536_vm1, %v2736_v26 }
  0x3d   : > { %2472 = vmatprep.mubr.msk.bf16.mxu0 %vm536_vm1, %v2721_v21  ;;  %2504 = vmatprep.mubr.msk.bf16.mxu1 %vm536_vm1, %v2737_v28 }
  0x44   : > { %2473 = vmatmul.mubr.msk.bf16.gmra.mxu0 %vm536_vm1, %v2722_v25  ;;  %2505 = vmatmul.mubr.msk.bf16.gmra.mxu1 %vm536_vm1, %v2738_v30 }
  0x45   : > { %2476 = vmatprep.mubr.msk.bf16.mxu0 %vm536_vm1, %v2723_v27  ;;  %2508 = vmatprep.mubr.msk.bf16.mxu1 %vm536_vm1, %v2739_v32 }
  0x4c   : > { %2477 = vmatmul.mubr.msk.bf16.gmra.mxu0 %vm536_vm1, %v2724_v29  ;;  %2509 = vmatmul.mubr.msk.bf16.gmra.mxu1 %vm536_vm1, %v2740_v34 }
  0x4d   : > { %2480 = vmatprep.mubr.msk.bf16.mxu0 %vm536_vm1, %v2725_v31  ;;  %2512 = vmatprep.mubr.msk.bf16.mxu1 %vm536_vm1, %v2741_v36 }
  0x54   : > { %2481 = vmatmul.mubr.msk.bf16.gmra.mxu0 %vm536_vm1, %v2726_v33  ;;  %2513 = vmatmul.mubr.msk.bf16.gmra.mxu1 %vm536_vm1, %v2742_v38 }
  0x55   : > { %2484 = vmatprep.mubr.msk.bf16.mxu0 %vm536_vm1, %v2727_v35  ;;  %2516 = vmatprep.mubr.msk.bf16.mxu1 %vm536_vm1, %v2743_v39 }
  0x5c   : > { %2485 = vmatmul.mubr.msk.bf16.gmra.mxu0 %vm536_vm1, %v2728_v37  ;;  %2517 = vmatmul.mubr.msk.bf16.gmra.mxu1 %vm536_vm1, %v2744_v40 }
  0xe4   : > { %v2458_v41 = vpop.f32.mrf.mxu0  ;;  %v3022_v54 = vpop.f32.mrf.mxu1 }
  0xe5   : > { %v680_v47 = vadd.f32 %v2458_v41, %v3010_v43 }
  0xe6   : > { %v671_v42 = vpop.f32.mrf.mxu0  ;;  %v3024_v59 = vpop.f32.mrf.mxu1 }
  0xe7   : > { %v672_v45 = vadd.f32 %v3010_v43, %v671_v42  ;;  %v928_v57 = vmax.f32 %v680_v47, 0.0 }
  0xe8   : > { %v2459_v44 = vpop.f32.mrf.mxu0  ;;  %v3026_v63 = vpop.f32.mrf.mxu1 }
  0xe9   : > { %v683_v46 = vadd.f32 %v2459_v44, %v3010_v43  ;;  %v926_v55 = vmax.f32 %v672_v45, 0.0 }
  0xea   : > { %v674_v48 = vpop.f32.mrf.mxu0  ;;  %v3033_v4 = vpop.f32.mrf.mxu1 }
  0xeb   : > { %v675_v51 = vadd.f32 %v3010_v43, %v674_v48  ;;  %v929_v52 = vmax.f32 %v683_v46, 0.0 }
  0xec   : > { %v2462_v53 = vpop.f32.mrf.mxu0  ;;  %v3036_v8 = vpop.f32.mrf.mxu1 }
  0xed   : > { %v927_v56 = vmax.f32 %v675_v51, 0.0  ;;  %v991_v61 = vpack.c.bf16 %v929_v52, %v928_v57  ;;  %v696_v2 = vadd.f32 %v2462_v53, %v3010_v43 }
  0xee   : > { %v687_v58 = vpop.f32.mrf.mxu0  ;;  %v3038_v13 = vpop.f32.mrf.mxu1 }
  0xef   : > { %v990_v60 = vpack.c.bf16 %v927_v56, %v926_v55  ;;  %v688_v0 = vadd.f32 %v3010_v43, %v687_v58  ;;  %v932_v11 = vmax.f32 %v696_v2, 0.0 }
  0xf0   : > { %v2463_v62 = vpop.f32.mrf.mxu0  ;;  %v3040_v17 = vpop.f32.mrf.mxu1 }
  0xf1   : > { %v699_v1 = vadd.f32 %v2463_v62, %v3010_v43  ;;  %2528 = vmatprep.mubr.msk.bf16.mxu1 %vm1061_vm2, %v990_v60  ;;  %v930_v9 = vmax.f32 %v688_v0, 0.0 }
  0xf2   : > { %v690_v3 = vpop.f32.mrf.mxu0  ;;  %2529 = vmatmul.mubr.msk.bf16.vlgmr.msra.gmra.mxu1 %vm1061_vm2, %v991_v61  ;;  %v3047_v22 = vpop.f32.mrf.mxu1 }
  0xf3   : > { %v691_v5 = vadd.f32 %v3010_v43, %v690_v3  ;;  %v933_v6 = vmax.f32 %v699_v1, 0.0 }
  0xf4   : > { %v2466_v7 = vpop.f32.mrf.mxu0  ;;  %v3050_v26 = vpop.f32.mrf.mxu1 }
  0xf5   : > { %v931_v10 = vmax.f32 %v691_v5, 0.0  ;;  %v993_v15 = vpack.c.bf16 %v933_v6, %v932_v11  ;;  %v712_v20 = vadd.f32 %v2466_v7, %v3010_v43 }
  0xf6   : > { %v703_v12 = vpop.f32.mrf.mxu0  ;;  %v3052_v34 = vpop.f32.mrf.mxu1 }
  0xf7   : > { %v992_v14 = vpack.c.bf16 %v931_v10, %v930_v9  ;;  %v704_v18 = vadd.f32 %v3010_v43, %v703_v12  ;;  %v936_v29 = vmax.f32 %v712_v20, 0.0 }
  0xf8   : > { %v2467_v16 = vpop.f32.mrf.mxu0  ;;  %v3060_v42 = vpop.f32.mrf.mxu1 }
  0xf9   : > { %v715_v19 = vadd.f32 %v2467_v16, %v3010_v43  ;;  %2532 = vmatprep.mubr.msk.bf16.mxu1 %vm1061_vm2, %v992_v14  ;;  %v934_v27 = vmax.f32 %v704_v18, 0.0 }
  0xfa   : > { %v706_v21 = vpop.f32.mrf.mxu0  ;;  %2533 = vmatmul.mubr.msk.bf16.gmra.mxu1 %vm1061_vm2, %v993_v15  ;;  %v3062_v51 = vpop.f32.mrf.mxu1 }
  0xfb   : > { %v707_v23 = vadd.f32 %v3010_v43, %v706_v21  ;;  %v937_v24 = vmax.f32 %v715_v19, 0.0 }
  0xfc   : > { %v2470_v25 = vpop.f32.mrf.mxu0  ;;  %v3070_v61 = vpop.f32.mrf.mxu1 }
  0xfd   : > { %v935_v28 = vmax.f32 %v707_v23, 0.0  ;;  %v995_v32 = vpack.c.bf16 %v937_v24, %v936_v29  ;;  %v728_v37 = vadd.f32 %v2470_v25, %v3010_v43 }
  0xfe   : > { %v719_v30 = vpop.f32.mrf.mxu0  ;;  %v3072_v7 = vpop.f32.mrf.mxu1 }
  0xff   : > { %v994_v31 = vpack.c.bf16 %v935_v28, %v934_v27  ;;  %v720_v35 = vadd.f32 %v3010_v43, %v719_v30  ;;  %v940_v46 = vmax.f32 %v728_v37, 0.0 }
 0x100   : > { %v2471_v33 = vpop.f32.mrf.mxu0  ;;  %v3080_v18 = vpop.f32.mrf.mxu1 }
 0x101   : > { %v731_v36 = vadd.f32 %v2471_v33, %v3010_v43  ;;  %2536 = vmatprep.mubr.msk.bf16.mxu1 %vm1061_vm2, %v994_v31  ;;  %v938_v44 = vmax.f32 %v720_v35, 0.0 }
 0x102   : > { %v722_v38 = vpop.f32.mrf.mxu0  ;;  %2537 = vmatmul.mubr.msk.bf16.gmra.mxu1 %vm1061_vm2, %v995_v32  ;;  %v3082_v28 = vpop.f32.mrf.mxu1 }
 0x103   : > { %v723_v39 = vadd.f32 %v3010_v43, %v722_v38  ;;  %v941_v40 = vmax.f32 %v731_v36, 0.0 }
 0x104   : > { %v2474_v41 = vpop.f32.mrf.mxu0  ;;  %v3090_v37 = vpop.f32.mrf.mxu1 }
 0x105   : > { %v939_v45 = vmax.f32 %v723_v39, 0.0  ;;  %v997_v49 = vpack.c.bf16 %v941_v40, %v940_v46  ;;  %v744_v55 = vadd.f32 %v2474_v41, %v3010_v43  ;;  %v803_v46 = vadd.f32 %v3010_v43, %v3033_v4 }
 0x106   : > { %v735_v47 = vpop.f32.mrf.mxu0 }
 0x107   : > { %v996_v48 = vpack.c.bf16 %v939_v45, %v938_v44  ;;  %v736_v52 = vadd.f32 %v3010_v43, %v735_v47  ;;  %v944_v1 = vmax.f32 %v744_v55, 0.0  ;;  %v800_v45 = vadd.f32 %v3010_v43, %v3024_v59 }
 0x108   : > { %v2475_v50 = vpop.f32.mrf.mxu0 }
 0x109   : > { %v747_v53 = vadd.f32 %v2475_v50, %v3010_v43  ;;  %2540 = vmatprep.mubr.msk.bf16.mxu1 %vm1061_vm2, %v996_v48  ;;  %v942_v62 = vmax.f32 %v736_v52, 0.0 }
 0x10a   : > { %v738_v56 = vpop.f32.mrf.mxu0  ;;  %2541 = vmatmul.mubr.msk.bf16.gmra.mxu1 %vm1061_vm2, %v997_v49  ;;  %v863_v49 = vpop.f32.mrf.mxu1 }
 0x10b   : > { %v739_v57 = vadd.f32 %v3010_v43, %v738_v56  ;;  %v945_v58 = vmax.f32 %v747_v53, 0.0  ;;  %v958_v56 = vmax.f32 %v800_v45, 0.0 }
 0x10c   : > { %v2478_v60 = vpop.f32.mrf.mxu0  ;;  %v3102_v4 = vpop.f32.mrf.mxu1 }
 0x10d   : > { %v943_v0 = vmax.f32 %v739_v57, 0.0  ;;  %v999_v5 = vpack.c.bf16 %v945_v58, %v944_v1  ;;  %v760_v11 = vadd.f32 %v2478_v60, %v3010_v43  ;;  %v959_v57 = vmax.f32 %v803_v46, 0.0 }
 0x10e   : > { %v751_v2 = vpop.f32.mrf.mxu0 }
 0x10f   : > { %v998_v3 = vpack.c.bf16 %v943_v0, %v942_v62  ;;  %v752_v9 = vadd.f32 %v3010_v43, %v751_v2  ;;  %v948_v21 = vmax.f32 %v760_v11, 0.0  ;;  %v1006_v2 = vpack.c.bf16 %v959_v57, %v958_v56  ;;  %v866_v11 = vpop.f32.mrf.mxu1 }
 0x110   : > { %v2479_v6 = vpop.f32.mrf.mxu0 }
 0x111   : > { %v763_v10 = vadd.f32 %v2479_v6, %v3010_v43  ;;  %2544 = vmatprep.mubr.msk.bf16.mxu1 %vm1061_vm2, %v998_v3  ;;  %v946_v19 = vmax.f32 %v752_v9, 0.0  ;;  %v816_v3 = vadd.f32 %v3010_v43, %v3038_v13  ;;  %v808_v6 = vadd.f32 %v3022_v54, %v3010_v43 }
 0x112   : > { %v754_v12 = vpop.f32.mrf.mxu0  ;;  %2545 = vmatmul.mubr.msk.bf16.gmra.mxu1 %vm1061_vm2, %v999_v5  ;;  %v819_v5 = vadd.f32 %v3010_v43, %v3047_v22  ;;  %v832_v54 = vadd.f32 %v3010_v43, %v3052_v34 }
 0x113   : > { %v755_v14 = vadd.f32 %v3010_v43, %v754_v12  ;;  %v949_v15 = vmax.f32 %v763_v10, 0.0  ;;  %v811_v10 = vadd.f32 %v3026_v63, %v3010_v43  ;;  %v3114_v12 = vpop.f32.mrf.mxu1  ;;  %v835_v63 = vadd.f32 %v3010_v43, %v3062_v51 }
 0x114   : > { %v2482_v16 = vpop.f32.mrf.mxu0  ;;  %v963_v13 = vmax.f32 %v819_v5, 0.0  ;;  %v848_v51 = vadd.f32 %v3010_v43, %v3072_v7 }
 0x115   : > { %v947_v20 = vmax.f32 %v755_v14, 0.0  ;;  %v1001_v25 = vpack.c.bf16 %v949_v15, %v948_v21  ;;  %v776_v31 = vadd.f32 %v2482_v16, %v3010_v43  ;;  %v962_v14 = vmax.f32 %v816_v3, 0.0  ;;  %v879_v16 = vpop.f32.mrf.mxu1 }
 0x116   : > { %v767_v23 = vpop.f32.mrf.mxu0  ;;  %v960_v15 = vmax.f32 %v808_v6, 0.0  ;;  %v961_v22 = vmax.f32 %v811_v10, 0.0  ;;  %v824_v21 = vadd.f32 %v3036_v8, %v3010_v43  ;;  %v851_v8 = vadd.f32 %v3010_v43, %v3082_v28 }
 0x117   : > { %v1000_v24 = vpack.c.bf16 %v947_v20, %v946_v19  ;;  %v768_v29 = vadd.f32 %v3010_v43, %v767_v23  ;;  %v952_v40 = vmax.f32 %v776_v31, 0.0  ;;  %v1008_v19 = vpack.c.bf16 %v963_v13, %v962_v14 }
 0x118   : > { %v2483_v27 = vpop.f32.mrf.mxu0  ;;  %v1007_v20 = vpack.c.bf16 %v961_v22, %v960_v15  ;;  %v827_v23 = vadd.f32 %v3040_v17, %v3010_v43  ;;  %v840_v17 = vadd.f32 %v3050_v26, %v3010_v43  ;;  %v864_v28 = vadd.f32 %v3010_v43, %v863_v49 }
 0x119   : > { %v779_v30 = vadd.f32 %v2483_v27, %v3010_v43  ;;  %2548 = vmatprep.mubr.msk.bf16.mxu1 %vm1061_vm2, %v1000_v24  ;;  %v950_v38 = vmax.f32 %v768_v29, 0.0  ;;  %v2511_v24 = vpop.f32.mrf.mxu1  ;;  %v967_v27 = vmax.f32 %v835_v63, 0.0  ;;  %v964_v29 = vmax.f32 %v824_v21, 0.0 }
 0x11a   : > { %v770_v32 = vpop.f32.mrf.mxu0  ;;  %2549 = vmatmul.mubr.msk.bf16.gmra.mxu1 %vm1061_vm2, %v1001_v25  ;;  %v966_v25 = vmax.f32 %v832_v54, 0.0  ;;  %v856_v26 = vadd.f32 %v3070_v61, %v3010_v43  ;;  %v872_v61 = vadd.f32 %v3090_v37, %v3010_v43  ;;  %v891_v3 = vadd.f32 %v2511_v24, %v3010_v43 }
 0x11b   : > { %v771_v33 = vadd.f32 %v3010_v43, %v770_v32  ;;  %v953_v35 = vmax.f32 %v779_v30, 0.0  ;;  %v965_v30 = vmax.f32 %v827_v23, 0.0  ;;  %v882_v34 = vpop.f32.mrf.mxu1 }
 0x11c   : > { %v2486_v36 = vpop.f32.mrf.mxu0  ;;  %v1010_v31 = vpack.c.bf16 %v967_v27, %v966_v25  ;;  %v883_v56 = vadd.f32 %v3010_v43, %v882_v34 }
 0x11d   : > { %v951_v39 = vmax.f32 %v771_v33, 0.0  ;;  %v1003_v47 = vpack.c.bf16 %v953_v35, %v952_v40  ;;  %v792_v53 = vadd.f32 %v2486_v36, %v3010_v43  ;;  %v1009_v32 = vpack.c.bf16 %v965_v30, %v964_v29  ;;  %v2514_v35 = vpop.f32.mrf.mxu1 }
 0x11e   : > { %v783_v41 = vpop.f32.mrf.mxu0  ;;  %v843_v33 = vadd.f32 %v3060_v42, %v3010_v43  ;;  %v970_v36 = vmax.f32 %v848_v51, 0.0  ;;  %v859_v42 = vadd.f32 %v3080_v18, %v3010_v43  ;;  %v875_v18 = vadd.f32 %v3102_v4, %v3010_v43 }
 0x11f   : > { %v1002_v44 = vpack.c.bf16 %v951_v39, %v950_v38  ;;  %v784_v50 = vadd.f32 %v3010_v43, %v783_v41  ;;  %v956_v0 = vmax.f32 %v792_v53, 0.0  ;;  %v971_v38 = vmax.f32 %v851_v8, 0.0  ;;  %v895_v7 = vpop.f32.mrf.mxu1 }
 0x120   : > { %v2487_v48 = vpop.f32.mrf.mxu0  ;;  %v968_v39 = vmax.f32 %v840_v17, 0.0  ;;  %v969_v40 = vmax.f32 %v843_v33, 0.0  ;;  %v896_v37 = vadd.f32 %v3010_v43, %v895_v7  ;;  %v3174_v17 = vld [vmem:[%s3379_s4] ss:$0 sm:$0xff] }
 0x121   : > { %v795_v52 = vadd.f32 %v2487_v48, %v3010_v43  ;;  %2552 = vmatprep.mubr.msk.bf16.mxu1 %vm1061_vm2, %v1002_v44  ;;  %v954_v60 = vmax.f32 %v784_v50, 0.0  ;;  %v1012_v41 = vpack.c.bf16 %v971_v38, %v970_v36  ;;  %v867_v44 = vadd.f32 %v3010_v43, %v866_v11  ;;  %v2515_v46 = vpop.f32.mrf.mxu1 }
 0x122   : > { %v786_v55 = vpop.f32.mrf.mxu0  ;;  %2553 = vmatmul.mubr.msk.bf16.gmra.mxu1 %vm1061_vm2, %v1003_v47  ;;  %v1011_v45 = vpack.c.bf16 %v969_v40, %v968_v39  ;;  %v974_v47 = vmax.f32 %v864_v28, 0.0  ;;  %v972_v50 = vmax.f32 %v856_v26, 0.0  ;;  %v981_v11 = vmax.f32 %v891_v3, 0.0 }
 0x123   : > { %v787_v59 = vadd.f32 %v3010_v43, %v786_v55  ;;  %v957_v58 = vmax.f32 %v795_v52, 0.0  ;;  %v975_v48 = vmax.f32 %v867_v44, 0.0  ;;  %v973_v52 = vmax.f32 %v859_v42, 0.0  ;;  %v898_v53 = vpop.f32.mrf.mxu1 }
 0x124   : > { %v880_v55 = vadd.f32 %v3010_v43, %v879_v16  ;;  %v899_v4 = vadd.f32 %v3010_v43, %v898_v53  ;;  %v982_v14 = vmax.f32 %v896_v37, 0.0  ;;  %v907_v16 = vadd.f32 %v2515_v46, %v3010_v43 }
 0x125   : > { %v955_v62 = vmax.f32 %v787_v59, 0.0  ;;  %v1005_v9 = vpack.c.bf16 %v957_v58, %v956_v0  ;;  %v1014_v49 = vpack.c.bf16 %v975_v48, %v974_v47  ;;  %v1013_v59 = vpack.c.bf16 %v973_v52, %v972_v50  ;;  %v2518_v57 = vpop.f32.mrf.mxu1 }
 0x126   : > { %v978_v58 = vmax.f32 %v880_v55, 0.0  ;;  %v977_v0 = vmax.f32 %v875_v18, 0.0  ;;  %v983_v13 = vmax.f32 %v899_v4, 0.0  ;;  %v985_v21 = vmax.f32 %v907_v16, 0.0 }
 0x127   : > { %v1004_v1 = vpack.c.bf16 %v955_v62, %v954_v60  ;;  %v979_v60 = vmax.f32 %v883_v56, 0.0  ;;  %v976_v62 = vmax.f32 %v872_v61, 0.0  ;;  %v920_v27 = vadd.f32 %v2518_v57, %v3010_v43 }
 0x129   : > { %2556 = vmatprep.mubr.msk.bf16.mxu1 %vm1061_vm2, %v1004_v1  ;;  %v911_v1 = vpop.f32.mrf.mxu1  ;;  %v1016_v5 = vpack.c.bf16 %v979_v60, %v978_v58  ;;  %v1015_v6 = vpack.c.bf16 %v977_v0, %v976_v62  ;;  %v988_v34 = vmax.f32 %v920_v27, 0.0 }
 0x12a   : > { %2557 = vmatmul.mubr.msk.bf16.gmra.mxu1 %vm1061_vm2, %v1005_v9  ;;  %v912_v54 = vadd.f32 %v3010_v43, %v911_v1 }
 0x12b   : > { %2560 = vmatprep.mubr.msk.bf16.mxu1 %vm1061_vm2, %v1006_v2  ;;  %v888_v2 = vadd.f32 %v3114_v12, %v3010_v43  ;;  %v2519_v9 = vpop.f32.mrf.mxu1  ;;  %v904_v12 = vadd.f32 %v2514_v35, %v3010_v43 }
 0x12c   : > { %v986_v23 = vmax.f32 %v912_v54, 0.0  ;;  %v923_v29 = vadd.f32 %v2519_v9, %v3010_v43 }
 0x12d   : > { %v980_v10 = vmax.f32 %v888_v2, 0.0  ;;  %v914_v15 = vpop.f32.mrf.mxu1 }
 0x12e   : > { %v915_v63 = vadd.f32 %v3010_v43, %v914_v15 }
 0x12f   : > { %v1017_v22 = vpack.c.bf16 %v981_v11, %v980_v10 }
 0x130   : > { %v987_v24 = vmax.f32 %v915_v63, 0.0 }
 0x132   : > { %2561 = vmatmul.mubr.msk.bf16.gmra.mxu1 %vm1061_vm2, %v1007_v20  ;;  %v984_v20 = vmax.f32 %v904_v12, 0.0  ;;  %v1020_v30 = vpack.c.bf16 %v987_v24, %v986_v23 }
 0x133   : > { %2564 = vmatprep.mubr.msk.bf16.mxu1 %vm1061_vm2, %v1008_v19  ;;  %v1018_v19 = vpack.c.bf16 %v983_v13, %v982_v14 }
 0x134   : > { %v1019_v25 = vpack.c.bf16 %v985_v21, %v984_v20 }
 0x13a   : > { %2565 = vmatmul.mubr.msk.bf16.gmra.mxu1 %vm1061_vm2, %v1009_v32 }
 0x13b   : > { %2568 = vmatprep.mubr.msk.bf16.mxu1 %vm1061_vm2, %v1010_v31  ;;  %v989_v31 = vmax.f32 %v923_v29, 0.0 }
 0x13d   : > { %v1021_v51 = vpack.c.bf16 %v989_v31, %v988_v34 }
 0x142   : > { %2569 = vmatmul.mubr.msk.bf16.gmra.mxu1 %vm1061_vm2, %v1011_v45 }
 0x143   : > { %2572 = vmatprep.mubr.msk.bf16.mxu1 %vm1061_vm2, %v1012_v41 }
 0x14a   : > { %2573 = vmatmul.mubr.msk.bf16.gmra.mxu1 %vm1061_vm2, %v1013_v59 }
 0x14b   : > { %2576 = vmatprep.mubr.msk.bf16.mxu1 %vm1061_vm2, %v1014_v49 }
 0x152   : > { %2577 = vmatmul.mubr.msk.bf16.gmra.mxu1 %vm1061_vm2, %v1015_v6 }
 0x153   : > { %2580 = vmatprep.mubr.msk.bf16.mxu1 %vm1061_vm2, %v1016_v5 }
 0x15a   : > { %2581 = vmatmul.mubr.msk.bf16.gmra.mxu1 %vm1061_vm2, %v1017_v22 }
 0x15b   : > { %2584 = vmatprep.mubr.msk.bf16.mxu1 %vm1061_vm2, %v1018_v19 }
 0x162   : > { %2585 = vmatmul.mubr.msk.bf16.gmra.mxu1 %vm1061_vm2, %v1019_v25 }
 0x163   : > { %2588 = vmatprep.mubr.msk.bf16.mxu1 %vm1061_vm2, %v1020_v30 }
 0x16a   : > { %2589 = vmatmul.mubr.msk.bf16.gmra.mxu1 %vm1061_vm2, %v1021_v51 }
 0x1b2   : > { %v2530_v8 = vpop.f32.mrf.mxu1 }
 0x1b3   : > { %v1201_v36 = vadd.f32 %v2530_v8, %v3174_v17 }
 0x1b4   : > { %v1192_v32 = vpop.f32.mrf.mxu1 }
 0x1b5   : > { %v1193_v43 = vadd.f32 %v3174_v17, %v1192_v32  ;;  %v1449_v44 = vmax.f32 %v1201_v36, 0.0 }
 0x1b6   : > { %v2531_v33 = vpop.f32.mrf.mxu1 }
 0x1b7   : > { %v1204_v35 = vadd.f32 %v2531_v33, %v3174_v17  ;;  %v1447_v41 = vmax.f32 %v1193_v43, 0.0 }
 0x1b8   : > { %v1195_v38 = vpop.f32.mrf.mxu1 }
 0x1b9   : > { %v1196_v39 = vadd.f32 %v3174_v17, %v1195_v38  ;;  %v1450_v40 = vmax.f32 %v1204_v35, 0.0 }
 0x1ba   : > { %v2534_v7 = vpop.f32.mrf.mxu1 }
 0x1bb   : > { %v1448_v28 = vmax.f32 %v1196_v39, 0.0  ;;  %v1512_v42 = vpack.c.bf16 %v1450_v40, %v1449_v44  ;;  %v1217_v50 = vadd.f32 %v2534_v7, %v3174_v17 }
 0x1bc   : > { %v1208_v45 = vpop.f32.mrf.mxu1 }
 0x1bd   : > { %v1511_v26 = vpack.c.bf16 %v1448_v28, %v1447_v41  ;;  %v1209_v47 = vadd.f32 %v3174_v17, %v1208_v45  ;;  %v1453_v61 = vmax.f32 %v1217_v50, 0.0 }
 0x1be   : > { %v2535_v46 = vpop.f32.mrf.mxu1 }
 0x1bf   : > { %v1220_v48 = vadd.f32 %v2535_v46, %v3174_v17  ;;  %2596 = vmatprep.mubr.msk.bf16.mxu0 %vm1566_vm3, %v1511_v26  ;;  %v1451_v56 = vmax.f32 %v1209_v47, 0.0 }
 0x1c0   : > { %v1211_v52 = vpop.f32.mrf.mxu1  ;;  %2597 = vmatmul.mubr.msk.bf16.vlgmr.msra.gmra.mxu0 %vm1566_vm3, %v1512_v42 }
 0x1c1   : > { %v1212_v53 = vadd.f32 %v3174_v17, %v1211_v52  ;;  %v1454_v49 = vmax.f32 %v1220_v48, 0.0 }
 0x1c2   : > { %v2538_v55 = vpop.f32.mrf.mxu1 }
 0x1c3   : > { %v1452_v59 = vmax.f32 %v1212_v53, 0.0  ;;  %v1514_v58 = vpack.c.bf16 %v1454_v49, %v1453_v61  ;;  %v1233_v1 = vadd.f32 %v2538_v55, %v3174_v17 }
 0x1c4   : > { %v1224_v18 = vpop.f32.mrf.mxu1 }
 0x1c5   : > { %v1513_v57 = vpack.c.bf16 %v1452_v59, %v1451_v56  ;;  %v1225_v62 = vadd.f32 %v3174_v17, %v1224_v18  ;;  %v1457_v9 = vmax.f32 %v1233_v1, 0.0 }
 0x1c6   : > { %v2539_v60 = vpop.f32.mrf.mxu1 }
 0x1c7   : > { %v1236_v0 = vadd.f32 %v2539_v60, %v3174_v17  ;;  %2600 = vmatprep.mubr.msk.bf16.mxu0 %vm1566_vm3, %v1513_v57  ;;  %v1455_v4 = vmax.f32 %v1225_v62, 0.0 }
 0x1c8   : > { %v1227_v2 = vpop.f32.mrf.mxu1  ;;  %2601 = vmatmul.mubr.msk.bf16.gmra.mxu0 %vm1566_vm3, %v1514_v58 }
 0x1c9   : > { %v1228_v3 = vadd.f32 %v3174_v17, %v1227_v2  ;;  %v1458_v5 = vmax.f32 %v1236_v0, 0.0 }
 0x1ca   : > { %v2542_v37 = vpop.f32.mrf.mxu1 }
 0x1cb   : > { %v1456_v6 = vmax.f32 %v1228_v3, 0.0  ;;  %v1516_v14 = vpack.c.bf16 %v1458_v5, %v1457_v9  ;;  %v1249_v12 = vadd.f32 %v2542_v37, %v3174_v17 }
 0x1cc   : > { %v1240_v10 = vpop.f32.mrf.mxu1 }
 0x1cd   : > { %v1515_v11 = vpack.c.bf16 %v1456_v6, %v1455_v4  ;;  %v1241_v15 = vadd.f32 %v3174_v17, %v1240_v10  ;;  %v1461_v23 = vmax.f32 %v1249_v12, 0.0 }
 0x1ce   : > { %v2543_v13 = vpop.f32.mrf.mxu1 }
 0x1cf   : > { %v1252_v22 = vadd.f32 %v2543_v13, %v3174_v17  ;;  %2604 = vmatprep.mubr.msk.bf16.mxu0 %vm1566_vm3, %v1515_v11  ;;  %v1459_v20 = vmax.f32 %v1241_v15, 0.0 }
 0x1d0   : > { %v1243_v16 = vpop.f32.mrf.mxu1  ;;  %2605 = vmatmul.mubr.msk.bf16.gmra.mxu0 %vm1566_vm3, %v1516_v14 }
 0x1d1   : > { %v1244_v19 = vadd.f32 %v3174_v17, %v1243_v16  ;;  %v1462_v54 = vmax.f32 %v1252_v22, 0.0 }
 0x1d2   : > { %v2546_v63 = vpop.f32.mrf.mxu1 }
 0x1d3   : > { %v1460_v21 = vmax.f32 %v1244_v19, 0.0  ;;  %v1518_v27 = vpack.c.bf16 %v1462_v54, %v1461_v23  ;;  %v1265_v31 = vadd.f32 %v2546_v63, %v3174_v17 }
 0x1d4   : > { %v1256_v24 = vpop.f32.mrf.mxu1 }
 0x1d5   : > { %v1517_v25 = vpack.c.bf16 %v1460_v21, %v1459_v20  ;;  %v1257_v30 = vadd.f32 %v3174_v17, %v1256_v24  ;;  %v1465_v36 = vmax.f32 %v1265_v31, 0.0 }
 0x1d6   : > { %v2547_v29 = vpop.f32.mrf.mxu1 }
 0x1d7   : > { %v1268_v34 = vadd.f32 %v2547_v29, %v3174_v17  ;;  %2608 = vmatprep.mubr.msk.bf16.mxu0 %vm1566_vm3, %v1517_v25  ;;  %v1463_v43 = vmax.f32 %v1257_v30, 0.0 }
 0x1d8   : > { %v1259_v51 = vpop.f32.mrf.mxu1  ;;  %2609 = vmatmul.mubr.msk.bf16.gmra.mxu0 %vm1566_vm3, %v1518_v27 }
 0x1d9   : > { %v1260_v8 = vadd.f32 %v3174_v17, %v1259_v51  ;;  %v1466_v32 = vmax.f32 %v1268_v34, 0.0 }
 0x1da   : > { %v2550_v33 = vpop.f32.mrf.mxu1 }
 0x1db   : > { %v1464_v35 = vmax.f32 %v1260_v8, 0.0  ;;  %v1520_v40 = vpack.c.bf16 %v1466_v32, %v1465_v36  ;;  %v1281_v44 = vadd.f32 %v2550_v33, %v3174_v17 }
 0x1dc   : > { %v1272_v38 = vpop.f32.mrf.mxu1 }
 0x1dd   : > { %v1519_v39 = vpack.c.bf16 %v1464_v35, %v1463_v43  ;;  %v1273_v41 = vadd.f32 %v3174_v17, %v1272_v38  ;;  %v1469_v50 = vmax.f32 %v1281_v44, 0.0 }
 0x1de   : > { %v2551_v7 = vpop.f32.mrf.mxu1 }
 0x1df   : > { %v1284_v28 = vadd.f32 %v2551_v7, %v3174_v17  ;;  %2612 = vmatprep.mubr.msk.bf16.mxu0 %vm1566_vm3, %v1519_v39  ;;  %v1467_v47 = vmax.f32 %v1273_v41, 0.0 }
 0x1e0   : > { %v1275_v45 = vpop.f32.mrf.mxu1  ;;  %2613 = vmatmul.mubr.msk.bf16.gmra.mxu0 %vm1566_vm3, %v1520_v40 }
 0x1e1   : > { %v1276_v26 = vadd.f32 %v3174_v17, %v1275_v45  ;;  %v1470_v42 = vmax.f32 %v1284_v28, 0.0 }
 0x1e2   : > { %v2554_v46 = vpop.f32.mrf.mxu1 }
 0x1e3   : > { %v1468_v48 = vmax.f32 %v1276_v26, 0.0  ;;  %v1522_v49 = vpack.c.bf16 %v1470_v42, %v1469_v50  ;;  %v1297_v61 = vadd.f32 %v2554_v46, %v3174_v17 }
 0x1e4   : > { %v1288_v52 = vpop.f32.mrf.mxu1 }
 0x1e5   : > { %v1521_v53 = vpack.c.bf16 %v1468_v48, %v1467_v47  ;;  %v1289_v56 = vadd.f32 %v3174_v17, %v1288_v52  ;;  %v1473_v1 = vmax.f32 %v1297_v61, 0.0 }
 0x1e6   : > { %v2555_v55 = vpop.f32.mrf.mxu1 }
 0x1e7   : > { %v1300_v59 = vadd.f32 %v2555_v55, %v3174_v17  ;;  %2616 = vmatprep.mubr.msk.bf16.mxu0 %vm1566_vm3, %v1521_v53  ;;  %v1471_v62 = vmax.f32 %v1289_v56, 0.0 }
 0x1e8   : > { %v1291_v18 = vpop.f32.mrf.mxu1  ;;  %2617 = vmatmul.mubr.msk.bf16.gmra.mxu0 %vm1566_vm3, %v1522_v49 }
 0x1e9   : > { %v1292_v57 = vadd.f32 %v3174_v17, %v1291_v18  ;;  %v1474_v58 = vmax.f32 %v1300_v59, 0.0 }
 0x1ea   : > { %v2558_v60 = vpop.f32.mrf.mxu1 }
 0x1eb   : > { %v1472_v0 = vmax.f32 %v1292_v57, 0.0  ;;  %v1524_v5 = vpack.c.bf16 %v1474_v58, %v1473_v1  ;;  %v1313_v9 = vadd.f32 %v2558_v60, %v3174_v17 }
 0x1ec   : > { %v1304_v2 = vpop.f32.mrf.mxu1 }
 0x1ed   : > { %v1523_v3 = vpack.c.bf16 %v1472_v0, %v1471_v62  ;;  %v1305_v4 = vadd.f32 %v3174_v17, %v1304_v2  ;;  %v1477_v12 = vmax.f32 %v1313_v9, 0.0 }
 0x1ee   : > { %v2559_v37 = vpop.f32.mrf.mxu1 }
 0x1ef   : > { %v1316_v6 = vadd.f32 %v2559_v37, %v3174_v17  ;;  %2620 = vmatprep.mubr.msk.bf16.mxu0 %vm1566_vm3, %v1523_v3  ;;  %v1475_v15 = vmax.f32 %v1305_v4, 0.0 }
 0x1f0   : > { %v1307_v10 = vpop.f32.mrf.mxu1  ;;  %2621 = vmatmul.mubr.msk.bf16.gmra.mxu0 %vm1566_vm3, %v1524_v5 }
 0x1f1   : > { %v1308_v11 = vadd.f32 %v3174_v17, %v1307_v10  ;;  %v1478_v14 = vmax.f32 %v1316_v6, 0.0 }
 0x1f2   : > { %v2562_v13 = vpop.f32.mrf.mxu1 }
 0x1f3   : > { %v1476_v22 = vmax.f32 %v1308_v11, 0.0  ;;  %v1526_v54 = vpack.c.bf16 %v1478_v14, %v1477_v12  ;;  %v1329_v23 = vadd.f32 %v2562_v13, %v3174_v17 }
 0x1f4   : > { %v1320_v16 = vpop.f32.mrf.mxu1 }
 0x1f5   : > { %v1525_v19 = vpack.c.bf16 %v1476_v22, %v1475_v15  ;;  %v1321_v20 = vadd.f32 %v3174_v17, %v1320_v16  ;;  %v1481_v31 = vmax.f32 %v1329_v23, 0.0 }
 0x1f6   : > { %v2563_v63 = vpop.f32.mrf.mxu1 }
 0x1f7   : > { %v1332_v21 = vadd.f32 %v2563_v63, %v3174_v17  ;;  %2624 = vmatprep.mubr.msk.bf16.mxu0 %vm1566_vm3, %v1525_v19  ;;  %v1479_v30 = vmax.f32 %v1321_v20, 0.0 }
 0x1f8   : > { %v1323_v24 = vpop.f32.mrf.mxu1  ;;  %2625 = vmatmul.mubr.msk.bf16.gmra.mxu0 %vm1566_vm3, %v1526_v54 }
 0x1f9   : > { %v1324_v25 = vadd.f32 %v3174_v17, %v1323_v24  ;;  %v1482_v27 = vmax.f32 %v1332_v21, 0.0 }
 0x1fa   : > { %v2566_v29 = vpop.f32.mrf.mxu1 }
 0x1fb   : > { %v1480_v34 = vmax.f32 %v1324_v25, 0.0  ;;  %v1528_v32 = vpack.c.bf16 %v1482_v27, %v1481_v31  ;;  %v1345_v36 = vadd.f32 %v2566_v29, %v3174_v17 }
 0x1fc   : > { %v1336_v51 = vpop.f32.mrf.mxu1 }
 0x1fd   : > { %v1527_v8 = vpack.c.bf16 %v1480_v34, %v1479_v30  ;;  %v1337_v43 = vadd.f32 %v3174_v17, %v1336_v51  ;;  %v1485_v44 = vmax.f32 %v1345_v36, 0.0 }
 0x1fe   : > { %v2567_v33 = vpop.f32.mrf.mxu1 }
 0x1ff   : > { %v1348_v35 = vadd.f32 %v2567_v33, %v3174_v17  ;;  %2628 = vmatprep.mubr.msk.bf16.mxu0 %vm1566_vm3, %v1527_v8  ;;  %v1483_v41 = vmax.f32 %v1337_v43, 0.0 }
 0x200   : > { %v1339_v38 = vpop.f32.mrf.mxu1  ;;  %2629 = vmatmul.mubr.msk.bf16.gmra.mxu0 %vm1566_vm3, %v1528_v32 }
 0x201   : > { %v1340_v39 = vadd.f32 %v3174_v17, %v1339_v38  ;;  %v1486_v40 = vmax.f32 %v1348_v35, 0.0 }
 0x202   : > { %v2570_v7 = vpop.f32.mrf.mxu1 }
 0x203   : > { %v1484_v28 = vmax.f32 %v1340_v39, 0.0  ;;  %v1530_v42 = vpack.c.bf16 %v1486_v40, %v1485_v44  ;;  %v1361_v50 = vadd.f32 %v2570_v7, %v3174_v17 }
 0x204   : > { %v1352_v45 = vpop.f32.mrf.mxu1 }
 0x205   : > { %v1529_v26 = vpack.c.bf16 %v1484_v28, %v1483_v41  ;;  %v1353_v47 = vadd.f32 %v3174_v17, %v1352_v45  ;;  %v1489_v61 = vmax.f32 %v1361_v50, 0.0 }
 0x206   : > { %v2571_v46 = vpop.f32.mrf.mxu1 }
 0x207   : > { %v1364_v48 = vadd.f32 %v2571_v46, %v3174_v17  ;;  %2632 = vmatprep.mubr.msk.bf16.mxu0 %vm1566_vm3, %v1529_v26  ;;  %v1487_v56 = vmax.f32 %v1353_v47, 0.0 }
 0x208   : > { %v1355_v52 = vpop.f32.mrf.mxu1  ;;  %2633 = vmatmul.mubr.msk.bf16.gmra.mxu0 %vm1566_vm3, %v1530_v42 }
 0x209   : > { %v1356_v53 = vadd.f32 %v3174_v17, %v1355_v52  ;;  %v1490_v49 = vmax.f32 %v1364_v48, 0.0 }
 0x20a   : > { %v2574_v55 = vpop.f32.mrf.mxu1 }
 0x20b   : > { %v1488_v59 = vmax.f32 %v1356_v53, 0.0  ;;  %v1532_v58 = vpack.c.bf16 %v1490_v49, %v1489_v61  ;;  %v1377_v1 = vadd.f32 %v2574_v55, %v3174_v17 }
 0x20c   : > { %v1368_v18 = vpop.f32.mrf.mxu1 }
 0x20d   : > { %v1531_v57 = vpack.c.bf16 %v1488_v59, %v1487_v56  ;;  %v1369_v62 = vadd.f32 %v3174_v17, %v1368_v18  ;;  %v1493_v9 = vmax.f32 %v1377_v1, 0.0 }
 0x20e   : > { %v2575_v60 = vpop.f32.mrf.mxu1 }
 0x20f   : > { %v1380_v0 = vadd.f32 %v2575_v60, %v3174_v17  ;;  %2636 = vmatprep.mubr.msk.bf16.mxu0 %vm1566_vm3, %v1531_v57  ;;  %v1491_v4 = vmax.f32 %v1369_v62, 0.0 }
 0x210   : > { %v1371_v2 = vpop.f32.mrf.mxu1  ;;  %2637 = vmatmul.mubr.msk.bf16.gmra.mxu0 %vm1566_vm3, %v1532_v58 }
 0x211   : > { %v1372_v3 = vadd.f32 %v3174_v17, %v1371_v2  ;;  %v1494_v5 = vmax.f32 %v1380_v0, 0.0 }
 0x212   : > { %v2578_v37 = vpop.f32.mrf.mxu1 }
 0x213   : > { %v1492_v6 = vmax.f32 %v1372_v3, 0.0  ;;  %v1534_v14 = vpack.c.bf16 %v1494_v5, %v1493_v9  ;;  %v1393_v12 = vadd.f32 %v2578_v37, %v3174_v17  ;;  %v3275_v5 = vld [vmem:[%s3381_s6] ss:$0 sm:$0xff] }
 0x214   : > { %v1384_v10 = vpop.f32.mrf.mxu1 }
 0x215   : > { %v1533_v11 = vpack.c.bf16 %v1492_v6, %v1491_v4  ;;  %v1385_v15 = vadd.f32 %v3174_v17, %v1384_v10  ;;  %v1497_v23 = vmax.f32 %v1393_v12, 0.0 }
 0x216   : > { %v2579_v13 = vpop.f32.mrf.mxu1 }
 0x217   : > { %v1396_v22 = vadd.f32 %v2579_v13, %v3174_v17  ;;  %2640 = vmatprep.mubr.msk.bf16.mxu0 %vm1566_vm3, %v1533_v11  ;;  %v1495_v20 = vmax.f32 %v1385_v15, 0.0 }
 0x218   : > { %v1387_v16 = vpop.f32.mrf.mxu1  ;;  %2641 = vmatmul.mubr.msk.bf16.gmra.mxu0 %vm1566_vm3, %v1534_v14 }
 0x219   : > { %v1388_v19 = vadd.f32 %v3174_v17, %v1387_v16  ;;  %v1498_v54 = vmax.f32 %v1396_v22, 0.0 }
 0x21a   : > { %v2582_v63 = vpop.f32.mrf.mxu1 }
 0x21b   : > { %v1496_v21 = vmax.f32 %v1388_v19, 0.0  ;;  %v1536_v27 = vpack.c.bf16 %v1498_v54, %v1497_v23  ;;  %v1409_v31 = vadd.f32 %v2582_v63, %v3174_v17 }
 0x21c   : > { %v1400_v24 = vpop.f32.mrf.mxu1 }
 0x21d   : > { %v1535_v25 = vpack.c.bf16 %v1496_v21, %v1495_v20  ;;  %v1401_v30 = vadd.f32 %v3174_v17, %v1400_v24  ;;  %v1501_v36 = vmax.f32 %v1409_v31, 0.0 }
 0x21e   : > { %v2583_v29 = vpop.f32.mrf.mxu1 }
 0x21f   : > { %v1412_v34 = vadd.f32 %v2583_v29, %v3174_v17  ;;  %2644 = vmatprep.mubr.msk.bf16.mxu0 %vm1566_vm3, %v1535_v25  ;;  %v1499_v43 = vmax.f32 %v1401_v30, 0.0 }
 0x220   : > { %v1403_v51 = vpop.f32.mrf.mxu1  ;;  %2645 = vmatmul.mubr.msk.bf16.gmra.mxu0 %vm1566_vm3, %v1536_v27 }
 0x221   : > { %v1404_v8 = vadd.f32 %v3174_v17, %v1403_v51  ;;  %v1502_v32 = vmax.f32 %v1412_v34, 0.0 }
 0x222   : > { %v2586_v33 = vpop.f32.mrf.mxu1 }
 0x223   : > { %v1500_v35 = vmax.f32 %v1404_v8, 0.0  ;;  %v1425_v38 = vadd.f32 %v2586_v33, %v3174_v17  ;;  %v1538_v41 = vpack.c.bf16 %v1502_v32, %v1501_v36 }
 0x224   : > { %v1416_v39 = vpop.f32.mrf.mxu1 }
 0x225   : > { %v1537_v40 = vpack.c.bf16 %v1500_v35, %v1499_v43  ;;  %v1417_v7 = vadd.f32 %v3174_v17, %v1416_v39  ;;  %v1505_v45 = vmax.f32 %v1425_v38, 0.0 }
 0x226   : > { %v2587_v28 = vpop.f32.mrf.mxu1 }
 0x227   : > { %v1428_v44 = vadd.f32 %v2587_v28, %v3174_v17  ;;  %2648 = vmatprep.mubr.msk.bf16.mxu0 %vm1566_vm3, %v1537_v40  ;;  %v1503_v42 = vmax.f32 %v1417_v7, 0.0 }
 0x228   : > { %v1419_v26 = vpop.f32.mrf.mxu1  ;;  %2649 = vmatmul.mubr.msk.bf16.gmra.mxu0 %vm1566_vm3, %v1538_v41 }
 0x229   : > { %v1506_v46 = vmax.f32 %v1428_v44, 0.0  ;;  %v1420_v47 = vadd.f32 %v3174_v17, %v1419_v26 }
 0x22a   : > { %v2590_v48 = vpop.f32.mrf.mxu1 }
 0x22b   : > { %v1504_v50 = vmax.f32 %v1420_v47, 0.0  ;;  %v1540_v52 = vpack.c.bf16 %v1506_v46, %v1505_v45  ;;  %v1441_v53 = vadd.f32 %v2590_v48, %v3174_v17 }
 0x22c   : > { %v1432_v49 = vpop.f32.mrf.mxu1 }
 0x22d   : > { %v1539_v55 = vpack.c.bf16 %v1504_v50, %v1503_v42  ;;  %v1433_v56 = vadd.f32 %v3174_v17, %v1432_v49  ;;  %v1509_v18 = vmax.f32 %v1441_v53, 0.0 }
 0x22e   : > { %v2591_v59 = vpop.f32.mrf.mxu1 }
 0x22f   : > { %2652 = vmatprep.mubr.msk.bf16.mxu0 %vm1566_vm3, %v1539_v55  ;;  %v1444_v61 = vadd.f32 %v2591_v59, %v3174_v17  ;;  %v1507_v58 = vmax.f32 %v1433_v56, 0.0 }
 0x230   : > { %2653 = vmatmul.mubr.msk.bf16.gmra.mxu0 %vm1566_vm3, %v1540_v52  ;;  %v1435_v57 = vpop.f32.mrf.mxu1 }
 0x231   : > { %v1510_v60 = vmax.f32 %v1444_v61, 0.0  ;;  %v1436_v62 = vadd.f32 %v3174_v17, %v1435_v57 }
 0x233   : > { %v1508_v0 = vmax.f32 %v1436_v62, 0.0  ;;  %v1542_v1 = vpack.c.bf16 %v1510_v60, %v1509_v18 }
 0x235   : > { %v1541_v2 = vpack.c.bf16 %v1508_v0, %v1507_v58 }
 0x237   : > { %2656 = vmatprep.mubr.msk.bf16.mxu0 %vm1566_vm3, %v1541_v2 }
 0x238   : > { %2657 = vmatmul.mubr.msk.bf16.gmra.mxu0 %vm1566_vm3, %v1542_v1 }
 0x280   : > { %v2598_v3 = vpop.f32.mrf.mxu0 }
 0x281   : > { %v1706_v14 = vadd.f32 %v2598_v3, %v3275_v5 }
 0x282   : > { %v1697_v37 = vpop.f32.mrf.mxu0 }
 0x283   : > { %v1698_v4 = vadd.f32 %v3275_v5, %v1697_v37 }
 0x284   : > { %v2599_v6 = vpop.f32.mrf.mxu0 }
 0x285   : > { %1952 = vxpose.xlu0.b32.start [1/16] (narrow) %v1698_v4, 8  ;;  %v1709_v22 = vadd.f32 %v2599_v6, %v3275_v5 }
 0x286   : > { %v1700_v9 = vpop.f32.mrf.mxu0 }
 0x287   : > { %v1701_v17 = vadd.f32 %v3275_v5, %v1700_v9 }
 0x288   : > { %v2602_v10 = vpop.f32.mrf.mxu0 }
 0x289   : > { %1953 = vxpose.xlu0.b32.cont [2/16] (narrow) %v1701_v17, 8  ;;  %v1722_v24 = vadd.f32 %v2602_v10, %v3275_v5 }
 0x28a   : > { %v1713_v11 = vpop.f32.mrf.mxu0 }
 0x28b   : > { %v1714_v19 = vadd.f32 %v3275_v5, %v1713_v11 }
 0x28c   : > { %v2603_v13 = vpop.f32.mrf.mxu0 }
 0x28d   : > { %1954 = vxpose.xlu0.b32.cont [3/16] (narrow) %v1706_v14, 8  ;;  %v1725_v29 = vadd.f32 %v2603_v13, %v3275_v5 }
 0x28e   : > { %v1716_v15 = vpop.f32.mrf.mxu0 }
 0x28f   : > { %v1717_v20 = vadd.f32 %v3275_v5, %v1716_v15 }
 0x290   : > { %v2606_v12 = vpop.f32.mrf.mxu0 }
 0x291   : > { %1955 = vxpose.xlu0.b32.cont [4/16] (narrow) %v1709_v22, 8  ;;  %v1738_v38 = vadd.f32 %v2606_v12, %v3275_v5 }
 0x292   : > { %v1729_v16 = vpop.f32.mrf.mxu0 }
 0x293   : > { %v1730_v31 = vadd.f32 %v3275_v5, %v1729_v16 }
 0x294   : > { %v2607_v54 = vpop.f32.mrf.mxu0 }
 0x295   : > { %1956 = vxpose.xlu0.b32.cont [5/16] (narrow) %v1714_v19, 8  ;;  %v1741_v41 = vadd.f32 %v2607_v54, %v3275_v5 }
 0x296   : > { %v1732_v63 = vpop.f32.mrf.mxu0 }
 0x297   : > { %v1733_v33 = vadd.f32 %v3275_v5, %v1732_v63 }
 0x298   : > { %v2610_v21 = vpop.f32.mrf.mxu0 }
 0x299   : > { %1957 = vxpose.xlu0.b32.cont [6/16] (narrow) %v1717_v20, 8  ;;  %v1754_v49 = vadd.f32 %v2610_v21, %v3275_v5 }
 0x29a   : > { %v1745_v23 = vpop.f32.mrf.mxu0 }
 0x29b   : > { %v1746_v26 = vadd.f32 %v3275_v5, %v1745_v23 }
 0x29c   : > { %v2611_v25 = vpop.f32.mrf.mxu0 }
 0x29d   : > { %1958 = vxpose.xlu0.b32.cont [7/16] (narrow) %v1722_v24, 8  ;;  %v1757_v61 = vadd.f32 %v2611_v25, %v3275_v5 }
 0x29e   : > { %v1748_v27 = vpop.f32.mrf.mxu0 }
 0x29f   : > { %v1749_v48 = vadd.f32 %v3275_v5, %v1748_v27 }
 0x2a0   : > { %v2614_v30 = vpop.f32.mrf.mxu0 }
 0x2a1   : > { %1959 = vxpose.xlu0.b32.cont [8/16] (narrow) %v1725_v29, 8  ;;  %v1770_v39 = vadd.f32 %v2614_v30, %v3275_v5 }
 0x2a2   : > { %v1761_v34 = vpop.f32.mrf.mxu0 }
 0x2a3   : > { %v1762_v51 = vadd.f32 %v3275_v5, %v1761_v34 }
 0x2a4   : > { %v2615_v8 = vpop.f32.mrf.mxu0 }
 0x2a5   : > { %1984 = vxpose.xlu1.b32.start [1/16] (narrow) %v1762_v51, 8  ;;  %1960 = vxpose.xlu0.b32.cont [9/16] (narrow) %v1730_v31, 8  ;;  %v1773_v28 = vadd.f32 %v2615_v8, %v3275_v5 }
 0x2a6   : > { %v1764_v32 = vpop.f32.mrf.mxu0 }
 0x2a7   : > { %v1765_v43 = vadd.f32 %v3275_v5, %v1764_v32 }
 0x2a8   : > { %v2618_v35 = vpop.f32.mrf.mxu0 }
 0x2a9   : > { %1985 = vxpose.xlu1.b32.cont [2/16] (narrow) %v1765_v43, 8  ;;  %1961 = vxpose.xlu0.b32.cont [10/16] (narrow) %v1733_v33, 8  ;;  %v1786_v55 = vadd.f32 %v2618_v35, %v3275_v5 }
 0x2aa   : > { %v1777_v36 = vpop.f32.mrf.mxu0 }
 0x2ab   : > { %v1778_v42 = vadd.f32 %v3275_v5, %v1777_v36 }
 0x2ac   : > { %v2619_v40 = vpop.f32.mrf.mxu0 }
 0x2ad   : > { %1986 = vxpose.xlu1.b32.cont [3/16] (narrow) %v1770_v39, 8  ;;  %1962 = vxpose.xlu0.b32.cont [11/16] (narrow) %v1738_v38, 8  ;;  %v1789_v18 = vadd.f32 %v2619_v40, %v3275_v5 }
 0x2ae   : > { %v1780_v7 = vpop.f32.mrf.mxu0 }
 0x2af   : > { %v1781_v50 = vadd.f32 %v3275_v5, %v1780_v7 }
 0x2b0   : > { %v2622_v44 = vpop.f32.mrf.mxu0 }
 0x2b1   : > { %1987 = vxpose.xlu1.b32.cont [4/16] (narrow) %v1773_v28, 8  ;;  %1963 = vxpose.xlu0.b32.cont [12/16] (narrow) %v1741_v41, 8  ;;  %v1802_v6 = vadd.f32 %v2622_v44, %v3275_v5 }
 0x2b2   : > { %v1793_v45 = vpop.f32.mrf.mxu0 }
 0x2b3   : > { %v1794_v60 = vadd.f32 %v3275_v5, %v1793_v45 }
 0x2b4   : > { %v2623_v46 = vpop.f32.mrf.mxu0 }
 0x2b5   : > { %1988 = vxpose.xlu1.b32.cont [5/16] (narrow) %v1778_v42, 8  ;;  %1964 = vxpose.xlu0.b32.cont [13/16] (narrow) %v1746_v26, 8  ;;  %v1805_v11 = vadd.f32 %v2623_v46, %v3275_v5 }
 0x2b6   : > { %v1796_v47 = vpop.f32.mrf.mxu0 }
 0x2b7   : > { %v1797_v2 = vadd.f32 %v3275_v5, %v1796_v47 }
 0x2b8   : > { %v2626_v52 = vpop.f32.mrf.mxu0 }
 0x2b9   : > { %1989 = vxpose.xlu1.b32.cont [6/16] (narrow) %v1781_v50, 8  ;;  %1965 = vxpose.xlu0.b32.cont [14/16] (narrow) %v1749_v48, 8  ;;  %v1818_v23 = vadd.f32 %v2626_v52, %v3275_v5 }
 0x2ba   : > { %v1809_v53 = vpop.f32.mrf.mxu0 }
 0x2bb   : > { %v1810_v22 = vadd.f32 %v3275_v5, %v1809_v53 }
 0x2bc   : > { %v2627_v56 = vpop.f32.mrf.mxu0 }
 0x2bd   : > { %1990 = vxpose.xlu1.b32.cont [7/16] (narrow) %v1786_v55, 8  ;;  %1966 = vxpose.xlu0.b32.cont [15/16] (narrow) %v1754_v49, 8  ;;  %v1821_v29 = vadd.f32 %v2627_v56, %v3275_v5 }
 0x2be   : > { %v1812_v59 = vpop.f32.mrf.mxu0 }
 0x2bf   : > { %v1813_v54 = vadd.f32 %v3275_v5, %v1812_v59 }
 0x2c0   : > { %v2630_v57 = vpop.f32.mrf.mxu0 }
 0x2c1   : > { %1991 = vxpose.xlu1.b32.cont [8/16] (narrow) %v1789_v18, 8  ;;  %1967 = vxpose.xlu0.b32.end [16/16] (narrow) %v1757_v61, 8  ;;  %v1834_v9 = vadd.f32 %v2630_v57, %v3275_v5 }
 0x2c2   : > { %v1825_v58 = vpop.f32.mrf.mxu0 }
 0x2c3   : > { %v1826_v62 = vadd.f32 %v3275_v5, %v1825_v58 }
 0x2c4   : > { %v2631_v0 = vpop.f32.mrf.mxu0 }
 0x2c5   : > { %1992 = vxpose.xlu1.b32.cont [9/16] (narrow) %v1794_v60, 8  ;;  %2016 = vxpose.xlu0.b32.start [1/16] (narrow) %v1826_v62, 8  ;;  %v1837_v14 = vadd.f32 %v2631_v0, %v3275_v5 }
 0x2c6   : > { %v1828_v1 = vpop.f32.mrf.mxu0 }
 0x2c7   : > { %v1829_v3 = vadd.f32 %v3275_v5, %v1828_v1 }
 0x2c8   : > { %v2634_v37 = vpop.f32.mrf.mxu0 }
 0x2c9   : > { %1993 = vxpose.xlu1.b32.cont [10/16] (narrow) %v1797_v2, 8  ;;  %2017 = vxpose.xlu0.b32.cont [2/16] (narrow) %v1829_v3, 8  ;;  %v1850_v24 = vadd.f32 %v2634_v37, %v3275_v5 }
 0x2ca   : > { %v1841_v4 = vpop.f32.mrf.mxu0 }
 0x2cb   : > { %v1842_v12 = vadd.f32 %v3275_v5, %v1841_v4 }
 0x2cc   : > { %v2635_v17 = vpop.f32.mrf.mxu0 }
 0x2cd   : > { %1994 = vxpose.xlu1.b32.cont [11/16] (narrow) %v1802_v6, 8  ;;  %2018 = vxpose.xlu0.b32.cont [3/16] (narrow) %v1834_v9, 8  ;;  %v1853_v30 = vadd.f32 %v2635_v17, %v3275_v5 }
 0x2ce   : > { %v1844_v10 = vpop.f32.mrf.mxu0 }
 0x2cf   : > { %v1845_v63 = vadd.f32 %v3275_v5, %v1844_v10 }
 0x2d0   : > { %v2638_v13 = vpop.f32.mrf.mxu0 }
 0x2d1   : > { %1995 = vxpose.xlu1.b32.cont [12/16] (narrow) %v1805_v11, 8  ;;  %2019 = vxpose.xlu0.b32.cont [4/16] (narrow) %v1837_v14, 8  ;;  %v1866_v38 = vadd.f32 %v2638_v13, %v3275_v5 }
 0x2d2   : > { %v1857_v15 = vpop.f32.mrf.mxu0 }
 0x2d3   : > { %v1858_v51 = vadd.f32 %v3275_v5, %v1857_v15 }
 0x2d4   : > { %v2639_v16 = vpop.f32.mrf.mxu0 }
 0x2d5   : > { %1996 = vxpose.xlu1.b32.cont [13/16] (narrow) %v1810_v22, 8  ;;  %2020 = vxpose.xlu0.b32.cont [5/16] (narrow) %v1842_v12, 8  ;;  %v1869_v7 = vadd.f32 %v2639_v16, %v3275_v5 }
 0x2d6   : > { %v1860_v19 = vpop.f32.mrf.mxu0 }
 0x2d7   : > { %v1861_v43 = vadd.f32 %v3275_v5, %v1860_v19 }
 0x2d8   : > { %v2642_v20 = vpop.f32.mrf.mxu0 }
 0x2d9   : > { %1997 = vxpose.xlu1.b32.cont [14/16] (narrow) %v1813_v54, 8  ;;  %2021 = vxpose.xlu0.b32.cont [6/16] (narrow) %v1845_v63, 8  ;;  %v1882_v48 = vadd.f32 %v2642_v20, %v3275_v5 }
 0x2da   : > { %v1873_v21 = vpop.f32.mrf.mxu0 }
 0x2db   : > { %v1874_v44 = vadd.f32 %v3275_v5, %v1873_v21 }
 0x2dc   : > { %v2643_v25 = vpop.f32.mrf.mxu0 }
 0x2dd   : > { %1998 = vxpose.xlu1.b32.cont [15/16] (narrow) %v1818_v23, 8  ;;  %2022 = vxpose.xlu0.b32.cont [7/16] (narrow) %v1850_v24, 8  ;;  %v1885_v53 = vadd.f32 %v2643_v25, %v3275_v5 }
 0x2de   : > { %v1876_v27 = vpop.f32.mrf.mxu0 }
 0x2df   : > { %v1877_v42 = vadd.f32 %v3275_v5, %v1876_v27 }
 0x2e0   : > { %v2646_v34 = vpop.f32.mrf.mxu0 }
 0x2e1   : > { %1999 = vxpose.xlu1.b32.end [16/16] (narrow) %v1821_v29, 8  ;;  %2023 = vxpose.xlu0.b32.cont [8/16] (narrow) %v1853_v30, 8  ;;  %v1898_v39 = vadd.f32 %v2646_v34, %v3275_v5 }
 0x2e2   : > { %v1889_v31 = vpop.f32.mrf.mxu0 }
 0x2e3   : > { %v1890_v8 = vadd.f32 %v3275_v5, %v1889_v31 }
 0x2e4   : > { %v2647_v32 = vpop.f32.mrf.mxu0 }
 0x2e5   : > { %2048 = vxpose.xlu1.b32.start [1/16] (narrow) %v1890_v8, 8  ;;  %2024 = vxpose.xlu0.b32.cont [9/16] (narrow) %v1858_v51, 8  ;;  %v1901_v41 = vadd.f32 %v2647_v32, %v3275_v5 }
 0x2e6   : > { %v1892_v33 = vpop.f32.mrf.mxu0 }
 0x2e7   : > { %v1893_v35 = vadd.f32 %v3275_v5, %v1892_v33 }
 0x2e8   : > { %v2650_v36 = vpop.f32.mrf.mxu0 }
 0x2e9   : > { %2049 = vxpose.xlu1.b32.cont [2/16] (narrow) %v1893_v35, 8  ;;  %2025 = vxpose.xlu0.b32.cont [10/16] (narrow) %v1861_v43, 8  ;;  %v1914_v50 = vadd.f32 %v2650_v36, %v3275_v5 }
 0x2ea   : > { %v1905_v40 = vpop.f32.mrf.mxu0 }
 0x2eb   : > { %v1906_v45 = vadd.f32 %v3275_v5, %v1905_v40 }
 0x2ec   : > { %v2651_v28 = vpop.f32.mrf.mxu0 }
 0x2ed   : > { %2050 = vxpose.xlu1.b32.cont [3/16] (narrow) %v1898_v39, 8  ;;  %2026 = vxpose.xlu0.b32.cont [11/16] (narrow) %v1866_v38, 8  ;;  %v1917_v49 = vadd.f32 %v2651_v28, %v3275_v5 }
 0x2ee   : > { %v1908_v26 = vpop.f32.mrf.mxu0 }
 0x2ef   : > { %v1909_v46 = vadd.f32 %v3275_v5, %v1908_v26 }
 0x2f0   : > { %v2654_v47 = vpop.f32.mrf.mxu0 }
 0x2f1   : > { %2051 = vxpose.xlu1.b32.cont [4/16] (narrow) %v1901_v41, 8  ;;  %2027 = vxpose.xlu0.b32.cont [12/16] (narrow) %v1869_v7, 8  ;;  %v1930_v57 = vadd.f32 %v2654_v47, %v3275_v5 }
 0x2f2   : > { %v1921_v52 = vpop.f32.mrf.mxu0 }
 0x2f3   : > { %v1922_v56 = vadd.f32 %v3275_v5, %v1921_v52 }
 0x2f4   : > { %v2655_v55 = vpop.f32.mrf.mxu0 }
 0x2f5   : > { %2052 = vxpose.xlu1.b32.cont [5/16] (narrow) %v1906_v45, 8  ;;  %2028 = vxpose.xlu0.b32.cont [13/16] (narrow) %v1874_v44, 8  ;;  %v1933_v60 = vadd.f32 %v2655_v55, %v3275_v5 }
 0x2f6   : > { %v1924_v59 = vpop.f32.mrf.mxu0 }
 0x2f7   : > { %v1925_v61 = vadd.f32 %v3275_v5, %v1924_v59 }
 0x2f8   : > { %v2658_v18 = vpop.f32.mrf.mxu0 }
 0x2f9   : > { %2053 = vxpose.xlu1.b32.cont [6/16] (narrow) %v1909_v46, 8  ;;  %2029 = vxpose.xlu0.b32.cont [14/16] (narrow) %v1877_v42, 8  ;;  %v1946_v3 = vadd.f32 %v2658_v18, %v3275_v5 }
 0x2fa   : > { %v1937_v58 = vpop.f32.mrf.mxu0 }
 0x2fb   : > { %v1938_v0 = vadd.f32 %v3275_v5, %v1937_v58 }
 0x2fc   : > { %v2659_v62 = vpop.f32.mrf.mxu0 }
 0x2fd   : > { %2054 = vxpose.xlu1.b32.cont [7/16] (narrow) %v1914_v50, 8  ;;  %2030 = vxpose.xlu0.b32.cont [15/16] (narrow) %v1882_v48, 8  ;;  %v1949_v37 = vadd.f32 %v2659_v62, %v3275_v5 }
 0x2fe   : > { %v1940_v1 = vpop.f32.mrf.mxu0 }
 0x2ff   : > { %v1941_v2 = vadd.f32 %v3275_v5, %v1940_v1 }
 0x301   : > { %2055 = vxpose.xlu1.b32.cont [8/16] (narrow) %v1917_v49, 8  ;;  %2031 = vxpose.xlu0.b32.end [16/16] (narrow) %v1885_v53, 8  ;;  %v1968_v4 = vpop.trf.xlu0 }
 0x305   : > { %2056 = vxpose.xlu1.b32.cont [9/16] (narrow) %v1922_v56, 8 }
 0x309   : > { %2057 = vxpose.xlu1.b32.cont [10/16] (narrow) %v1925_v61, 8 }
 0x30d   : > { %2058 = vxpose.xlu1.b32.cont [11/16] (narrow) %v1930_v57, 8 }
 0x311   : > { %2059 = vxpose.xlu1.b32.cont [12/16] (narrow) %v1933_v60, 8 }
 0x315   : > { %2060 = vxpose.xlu1.b32.cont [13/16] (narrow) %v1938_v0, 8 }
 0x319   : > { %2061 = vxpose.xlu1.b32.cont [14/16] (narrow) %v1941_v2, 8 }
 0x31d   : > { %2062 = vxpose.xlu1.b32.cont [15/16] (narrow) %v1946_v3, 8 }
 0x321   : > { %2063 = vxpose.xlu1.b32.end [16/16] (narrow) %v1949_v37, 8  ;;  %v2000_v6 = vpop.trf.xlu1 }
 0x322   : > { %v2080_v10 = vmax.f32 %v1968_v4, %v2000_v6 }
 0x341   : > { %v2032_v9 = vpop.trf.xlu0 }
 0x361   : > { %v2064_v17 = vpop.trf.xlu1 }
 0x362   : > { %v2081_v11 = vmax.f32 %v2032_v9, %v2064_v17 }
 0x364   : > { %v2082_v14 = vmax.f32 %v2080_v10, %v2081_v11 }
 0x366   : > { %v2083_v13 = vsub.f32 %v1968_v4, %v2082_v14  ;;  %v2086_v15 = vsub.f32 %v2000_v6, %v2082_v14  ;;  %v2089_v22 = vsub.f32 %v2032_v9, %v2082_v14  ;;  %v2092_v12 = vsub.f32 %v2064_v17, %v2082_v14 }
 0x368   : > { %v2084_v16 = vmul.f32 1.442695, %v2083_v13  ;;  %v2087_v19 = vmul.f32 1.442695, %v2086_v15  ;;  %v2090_v54 = vmul.f32 1.442695, %v2089_v22 }
 0x369   : > { %v2093_v63 = vmul.f32 1.442695, %v2092_v12 }
 0x36a   : > { %2751 = vpow2.f32 %v2084_v16 }
 0x36b   : > { %2753 = vpow2.f32 %v2087_v19 }
 0x36c   : > { %2755 = vpow2.f32 %v2090_v54 }
 0x36d   : > { %2757 = vpow2.f32 %v2093_v63 }
 0x377   : > { %v2752_v5 = vpop.eup %2751 }
 0x378   : > { %v2754_v20 = vpop.eup %2753  ;;  %v2099_v27 = vrot.slane %v2752_v5, 1 }
 0x379   : > { %v2095_v21 = vadd.f32 %v2754_v20, %v2752_v5  ;;  %v2756_v23 = vpop.eup %2755  ;;  %v2103_v29 = vrot.slane %v2754_v20, 1 }
 0x37a   : > { %v2758_v25 = vpop.eup %2757  ;;  %v2101_v34 = vmul.f32 %v2099_v27, %v1968_v4  ;;  %v2108_v51 = vrot.slane %v2756_v23, 1 }
 0x37b   : > { %v2096_v24 = vadd.f32 %v2756_v23, %v2095_v21  ;;  %v2105_v31 = vmul.f32 %v2103_v29, %v2000_v6  ;;  %v2113_v33 = vrot.slane %v2758_v25, 1 }
 0x37c   : > { %v2110_v32 = vmul.f32 %v2108_v51, %v2032_v9 }
 0x37d   : > { %v2097_v30 = vadd.f32 %v2758_v25, %v2096_v24  ;;  %v2106_v8 = vadd.f32 %v2105_v31, %v2101_v34  ;;  %v2115_v35 = vmul.f32 %v2113_v33, %v2064_v17 }
 0x37f   : > { %2759 = vrcp.f32 %v2097_v30  ;;  %v2111_v43 = vadd.f32 %v2110_v32, %v2106_v8 }
 0x381   : > { %v2116_v38 = vadd.f32 %v2115_v35, %v2111_v43 }
 0x38c   : > { %v2760_v36 = vpop.eup %2759 }
 0x38d   : > { %v2119_v39 = vrot.slane %v2760_v36, 1 }
 0x38f   : > { %v2121_v40 = vmul.f32 %v2119_v39, %v2116_v38 }
 0x391   : > { %2122 = vst [vmem:[%s270_s18] sm:$0x1] %v2121_v40 }
 0x392   : > { %2774 = shalt.err (!%p2771_p3)
}
 0x393   : > { %s2775_s13 = scalar_lea.hbm %s2134_s22, 16  ;;  %s2779_s16 = scalar_lea.hbm %s3382_s7, 32 }
 0x394   : > { %p2776_p4 = scmp.ne.s32.totalorder %s2134_s22, %s2775_s13  ;;  %p2780_p9 = scmp.lt.s32.totalorder %s2134_s22, %s3382_s7 }
 0x395   : > { %p2781_p10 = scmp.lt.s32.totalorder %s2779_s16, %s2775_s13 }
 0x396   : > { %p2777_p7 = pnand %p2776_p4, %p2902_p5 }
 0x397   : > { %p2782_p11 = por %p2781_p10, %p2780_p9 }
 0x398   : > { %p2778_p8 = pneg %p2777_p7 }
 0x39a   : > { %p2783_p12 = pnand %p2782_p11, %p2778_p8 }
 0x39c   : > { %2786 = shalt.err (!%p2783_p12)
}
 0x39d   : > { %2670 = dma.vmem_to_hbm [thread:$0]  (%p2902_p5), %s2137_s19, 16, %s2134_s22, %s2124_s29  }
 0x39e PF: > { %p2676_p13 = scmp.ge.s32.totalorder %s2821_s27, 2  ;;  %s2148_s20 = sand.u32 1, %s2809_s24  }
 0x39f   : > { %s2149_s21 = scalar_lea.sflag [#allocation3], %s2148_s20 }
 0x3a0   : > { %p2673_p0 = pnand %p2676_p13, %p2906_p6 }
 0x3a2   : > { %p2674_p1 = pneg %p2673_p0 }
 0x3a4   : > { %2804 = dma.done.wait (%p2674_p1), %s2149_s21, 16  }
 0x3a5   : > { %2806 = vsyncadd (%p2674_p1), %s2149_s21, 4294967280  ;;  %p17_p2 = scmp.ge.s32.totalorder %s2889_s30, 4   ;;  %s3385_s24 = smov %s2813_s25 }
 0x3a6   : > { %s3386_s25 = smov %s2817_s26  ;;  %s3387_s26 = smov %s2900_s10 }
 0x3a7   : > { %s3388_s27 = smov %s2889_s30  ;;  %19 = sbr.rel (!%p17_p2) target bundleno = 3 (0x3), region = 83 }
 0x3ac   :  { %2153 = vsyncpa [#allocation3], 1 }
 0x3ad   :  { %2155 = vsyncpa [#allocation3 + $0x1], 1 }

</bundles_post_ra>
